<compile_context>
chip_gen: v5e
topology: v5e:2x2
jax: 0.10.0
libtpu: 0.0.40
codegen_flags: <defaults>
</compile_context>

<pallas_src>
import functools
import math

import jax
import jax.numpy as jnp
from jax.experimental import pallas as pl
from jax.experimental.pallas import tpu as pltpu


# ----------------------------------------------------------------------------
# The single fused kernel:
#   encoder layer -> CLS pool -> deep_reduce -> (split-weight concat) DNN -> out
# ----------------------------------------------------------------------------
def _wdl_fused_kernel(x_ref, wide_ref,
                      qkv_w_ref, qkv_b_ref, o_w_ref, o_b_ref,
                      ln1_g_ref, ln1_b_ref, f1_w_ref, f1_b_ref,
                      f2_w_ref, f2_b_ref, ln2_g_ref, ln2_b_ref,
                      dr_w_ref, dr_b_ref, w0w_ref, w0d_ref, b0_ref,
                      *rest, num_heads, eps):
    """One grid step = Bblk batch elements.  Everything stays in VMEM/vregs; only
    the (Bblk, 1, out_pad) logits block leaves the kernel."""
    out_ref = rest[-1]
    wb_refs = rest[:-1]                               # remaining DNN (w, b) pairs + out

    x = x_ref[...].astype(jnp.float32)                # (Bblk, S, H)
    Bblk, S, H = x.shape
    Dh = H // num_heads
    R = Bblk * S

    def layernorm(v, g_ref, b_ref):                   # f32 math, matches nn.LayerNorm
        mu = jnp.mean(v, axis=-1, keepdims=True)
        var = jnp.mean((v - mu) ** 2, axis=-1, keepdims=True)
        return (v - mu) * jax.lax.rsqrt(var + eps) * g_ref[...] + b_ref[...]

    # ---- Q/K/V projections: full-height (Bblk*S, H) bf16 MXU tiles ---------------
    # (1/sqrt(Dh) is folded into Wq/bq at parameter-prep time.)
    x2 = x.reshape(R, H)
    x2b = x2.astype(jnp.bfloat16)
    q = jnp.dot(x2b, qkv_w_ref[0], preferred_element_type=jnp.float32) + qkv_b_ref[0]
    k = jnp.dot(x2b, qkv_w_ref[1], preferred_element_type=jnp.float32) + qkv_b_ref[1]
    v = jnp.dot(x2b, qkv_w_ref[2], preferred_element_type=jnp.float32) + qkv_b_ref[2]

    q3 = q.reshape(Bblk, S, H).astype(jnp.bfloat16)
    k3 = k.reshape(Bblk, S, H).astype(jnp.bfloat16)
    v3 = v.reshape(Bblk, S, H).astype(jnp.bfloat16)

    # ---- per-head attention, batched over Bblk; heads accumulate directly into the
    #      o_proj output (no lane-axis concat of heads) --------------------------------
    o_w = o_w_ref[...]                                # (H, H) bf16, loaded once
    attn = jnp.zeros((Bblk, S, H), jnp.float32)
    for h in range(num_heads):                        # static unrolled loop
        sl = slice(h * Dh, (h + 1) * Dh)
        qh, kh, vh = q3[:, :, sl], k3[:, :, sl], v3[:, :, sl]
        s = jnp.einsum("bqd,bkd->bqk", qh, kh,
                       preferred_element_type=jnp.float32)      # scale pre-folded
        s = s - jnp.max(s, axis=-1, keepdims=True)
        p = jnp.exp(s)                                           # f32 softmax
        p = p * pl.reciprocal(jnp.sum(p, axis=-1, keepdims=True), approx=True)
        oh = jnp.einsum("bqk,bkd->bqd", p.astype(jnp.bfloat16), vh,
                        preferred_element_type=jnp.float32)
        attn = attn + jnp.einsum("bqd,dh->bqh", oh.astype(jnp.bfloat16),
                                 o_w[sl, :], preferred_element_type=jnp.float32)

    attn2 = attn.reshape(R, H) + o_b_ref[...]
    h1 = layernorm(x2 + attn2, ln1_g_ref, ln1_b_ref)

    # ---- FFN + residual + LayerNorm ------------------------------------------------
    ffn = jnp.dot(h1.astype(jnp.bfloat16), f1_w_ref[...],
                  preferred_element_type=jnp.float32) + f1_b_ref[...]
    # TODO(synk): PyTorch nn.GELU defaults to exact erf GELU; tanh approximation used
    # here for guaranteed Mosaic lowering (small numeric drift).
    ffn = jax.nn.gelu(ffn, approximate=True)
    ffn = jnp.dot(ffn.astype(jnp.bfloat16), f2_w_ref[...],
                  preferred_element_type=jnp.float32) + f2_b_ref[...]
    h2 = layernorm(h1 + ffn, ln2_g_ref, ln2_b_ref)

    # ---- CLS pooling (token 0 of every sequence) -> (Bblk, H) -----------------------
    cls = h2.reshape(Bblk, S, H)[:, 0, :]

    # ---- fused head: deep_reduce + concat folded into split first-DNN weight -------
    wide_b = wide_ref[...].reshape(Bblk, -1).astype(jnp.bfloat16)     # (Bblk, wide_dim)
    dred = jnp.dot(cls.astype(jnp.bfloat16), dr_w_ref[...],
                   preferred_element_type=jnp.float32) + dr_b_ref[...]
    #   concat([wide, dred]) @ W0  ==  wide @ W0_top + dred @ W0_bot   (exact)
    hh = (jnp.dot(wide_b, w0w_ref[...], preferred_element_type=jnp.float32)
          + jnp.dot(dred.astype(jnp.bfloat16), w0d_ref[...],
                    preferred_element_type=jnp.float32)
          + b0_ref[...])
    hh = jnp.maximum(hh, 0.0)                         # relu (dropout = eval identity)

    n_pairs = len(wb_refs) // 2
    for i in range(n_pairs):                          # remaining DNN layers + out
        w = wb_refs[2 * i][...]
        b = wb_refs[2 * i + 1][...]
        hh = jnp.dot(hh.astype(jnp.bfloat16), w,
                     preferred_element_type=jnp.float32) + b
        if i < n_pairs - 1:                           # hidden layers get relu, out does not
            hh = jnp.maximum(hh, 0.0)

    # lane-dense (zero-padded to 128 lanes) logits store
    out_ref[...] = hh.reshape(Bblk, 1, -1).astype(out_ref.dtype)


# ----------------------------------------------------------------------------
# Wrapper
# ----------------------------------------------------------------------------
def _const_spec(shape):
    """Grid-invariant block: full array, index map constant -> loaded once, resident."""
    return pl.BlockSpec(shape, lambda b, _n=len(shape): (0,) * _n)


def _pick_block_b(batch, seq, target_rows=256):
    """Largest divisor of `batch` whose flattened row count stays near the MXU height."""
    cap = max(1, target_rows // max(seq, 1))
    for bb in range(min(batch, cap), 0, -1):
        if batch % bb == 0:
            return bb
    return 1


def wide_deep_fused_pallas(prepped, x_wide_flat, x_deep, *, num_heads,
                           eps=1e-12, block_b=None):
    B, S, H = x_deep.shape
    wide3 = x_wide_flat.reshape(B, 1, -1)             # 3D so last-two dims are full-extent
    W = wide3.shape[-1]
    out_pad = prepped["rest"][-1].shape[-1]            # lane-padded logits width

    Bblk = block_b if block_b is not None else _pick_block_b(B, S)
    grid = (B // Bblk,)

    const_args = (
        prepped["qkv_w"], prepped["qkv_b"],
        prepped["o_w"], prepped["o_b"],
        prepped["ln1_g"], prepped["ln1_b"],
        prepped["f1_w"], prepped["f1_b"],
        prepped["f2_w"], prepped["f2_b"],
        prepped["ln2_g"], prepped["ln2_b"],
        prepped["dr_w"], prepped["dr_b"],
        prepped["w0w"], prepped["w0d"], prepped["b0"],
    ) + tuple(prepped["rest"])

    in_specs = [
        pl.BlockSpec((Bblk, S, H), lambda b: (b, 0, 0)),
        pl.BlockSpec((Bblk, 1, W), lambda b: (b, 0, 0)),
    ] + [_const_spec(a.shape) for a in const_args]

    kernel = functools.partial(_wdl_fused_kernel, num_heads=num_heads, eps=eps)
    out = pl.pallas_call(
        kernel,
        out_shape=jax.ShapeDtypeStruct((B, 1, out_pad), jnp.float32),
        grid=grid,
        in_specs=in_specs,
        out_specs=pl.BlockSpec((Bblk, 1, out_pad), lambda b: (b, 0, 0)),
        compiler_params=pltpu.CompilerParams(
            dimension_semantics=("parallel",),        # v7x: both TCs when grid >= 2
            vmem_limit_bytes=64 * 1024 * 1024),       # headroom for the scaled config
    )(x_deep, wide3, *const_args)
    return out[:, 0, :]                               # (B, out_pad)


# ----------------------------------------------------------------------------
# Parameter construction & one-time kernel-ready preparation
# ----------------------------------------------------------------------------
def _init_linear(key, fan_in, fan_out):
    kw, kb = jax.random.split(key)
    w = jax.random.normal(kw, (fan_in, fan_out), jnp.float32) * 0.02
    b = jax.random.normal(kb, (fan_out,), jnp.float32) * 0.02
    return {"w": w, "b": b}


def init_params(key, *, wide_dim, deep_hidden, num_heads, ffn_dim,
                dnn_hidden_units, num_labels):
    keys = jax.random.split(key, 16)
    params = {
        "q_proj": _init_linear(keys[0], deep_hidden, deep_hidden),
        "k_proj": _init_linear(keys[1], deep_hidden, deep_hidden),
        "v_proj": _init_linear(keys[2], deep_hidden, deep_hidden),
        "o_proj": _init_linear(keys[3], deep_hidden, deep_hidden),
        "ln1_g": jnp.ones((deep_hidden,), jnp.float32),
        "ln1_b": jnp.zeros((deep_hidden,), jnp.float32),
        "ffn_in": _init_linear(keys[4], deep_hidden, ffn_dim),
        "ffn_out": _init_linear(keys[5], ffn_dim, deep_hidden),
        "ln2_g": jnp.ones((deep_hidden,), jnp.float32),
        "ln2_b": jnp.zeros((deep_hidden,), jnp.float32),
        "deep_reduce": _init_linear(keys[6], deep_hidden, wide_dim),
        "dnn": [],
    }
    in_dim = wide_dim * 2
    for li, h in enumerate(dnn_hidden_units):
        params["dnn"].append(_init_linear(keys[7 + li], in_dim, h))
        in_dim = h
    params["out"] = _init_linear(keys[12], in_dim, num_labels)
    return params


def prepare_params(params, *, num_heads):
    """Build kernel-ready tensors ONCE (outside the per-step forward):
    bf16 weights, stacked & pre-scaled QKV, split first-DNN weight, lane-padded out."""
    H = params["q_proj"]["w"].shape[0]
    Dh = H // num_heads
    scale = 1.0 / math.sqrt(Dh)
    wdt = jnp.bfloat16

    wq = params["q_proj"]["w"] * scale                # fold softmax 1/sqrt(Dh) into Wq/bq
    bq = params["q_proj"]["b"] * scale
    qkv_w = jnp.stack([wq, params["k_proj"]["w"], params["v_proj"]["w"]]).astype(wdt)
    qkv_b = jnp.stack([bq, params["k_proj"]["b"],
                       params["v_proj"]["b"]]).reshape(3, 1, H).astype(jnp.float32)

    wide_dim = params["deep_reduce"]["w"].shape[1]
    dnn = params["dnn"]
    w0 = dnn[0]["w"]                                  # (2*wide_dim, h0)

    num_labels = params["out"]["w"].shape[1]
    out_pad = ((num_labels + 127) // 128) * 128       # lane-dense final store
    w_out = jnp.zeros((params["out"]["w"].shape[0], out_pad), jnp.float32)
    w_out = w_out.at[:, :num_labels].set(params["out"]["w"])
    b_out = jnp.zeros((1, out_pad), jnp.float32)
    b_out = b_out.at[:, :num_labels].set(params["out"]["b"])

    rest = []
    for layer in dnn[1:]:
        rest += [layer["w"].astype(wdt), layer["b"].reshape(1, -1)]
    rest += [w_out.astype(wdt), b_out]

    return {
        "qkv_w": qkv_w, "qkv_b": qkv_b,
        "o_w": params["o_proj"]["w"].astype(wdt),
        "o_b": params["o_proj"]["b"].reshape(1, H),
        "ln1_g": params["ln1_g"].reshape(1, H), "ln1_b": params["ln1_b"].reshape(1, H),
        "f1_w": params["ffn_in"]["w"].astype(wdt),
        "f1_b": params["ffn_in"]["b"].reshape(1, -1),
        "f2_w": params["ffn_out"]["w"].astype(wdt),
        "f2_b": params["ffn_out"]["b"].reshape(1, H),
        "ln2_g": params["ln2_g"].reshape(1, H), "ln2_b": params["ln2_b"].reshape(1, H),
        "dr_w": params["deep_reduce"]["w"].astype(wdt),
        "dr_b": params["deep_reduce"]["b"].reshape(1, -1),
        "w0w": w0[:wide_dim, :].astype(wdt),          # wide half of first DNN weight
        "w0d": w0[wide_dim:, :].astype(wdt),          # deep half of first DNN weight
        "b0": dnn[0]["b"].reshape(1, -1),
        "rest": tuple(rest),
    }


# ----------------------------------------------------------------------------
# Forward pass (mirrors WideDeepEFv1.forward)
# ----------------------------------------------------------------------------
def wide_deep_ef_v1_forward(prepped, x_wide, x_deep, *, num_heads, num_labels):
    B = x_wide.shape[0]
    wide_output = x_wide.reshape(B, -1)               # WideFlatten (pure reshape)
    logits_pad = wide_deep_fused_pallas(prepped, wide_output, x_deep,
                                        num_heads=num_heads)
    logit = logits_pad[:, :num_labels]                # drop lane padding
    return (logit, logit, logit)


# ----------------------------------------------------------------------------
if __name__ == "__main__":
    # small synthetic config
    B = 2
    N_FIELDS, FIELD_EMB = 4, 8          # wide_output_dim = 32
    WIDE_DIM = N_FIELDS * FIELD_EMB
    S, H = 8, 64                        # deep branch (H stands in for 768)
    NUM_HEADS = 4
    FFN_DIM = 128
    DNN_HIDDEN_UNITS = (64, 32)
    NUM_LABELS = 3

    key = jax.random.PRNGKey(0)
    k_params, k_wide, k_deep = jax.random.split(key, 3)

    params = init_params(
        k_params,
        wide_dim=WIDE_DIM,
        deep_hidden=H,
        num_heads=NUM_HEADS,
        ffn_dim=FFN_DIM,
        dnn_hidden_units=DNN_HIDDEN_UNITS,
        num_labels=NUM_LABELS,
    )
    prepped = prepare_params(params, num_heads=NUM_HEADS)   # one-time weight prep

    x_wide = jax.random.normal(k_wide, (B, N_FIELDS, FIELD_EMB), jnp.float32)
    x_deep = jax.random.normal(k_deep, (B, S, H), jnp.float32)

    fwd = jax.jit(functools.partial(wide_deep_ef_v1_forward,
                                    num_heads=NUM_HEADS, num_labels=NUM_LABELS))
    out = fwd(prepped, x_wide, x_deep)
    out = jax.block_until_ready(out)

    assert out[0].shape == (B, NUM_LABELS)
    assert out[0].dtype == jnp.float32
    assert len(out) == 3
    print("KERNEL_OK")
</pallas_src>

<mosaic_0001>
module attributes {stable_mosaic.version = 11 : i64} {
  func.func @_wdl_fused_kernel(%arg0: i32, %arg1: memref<2x8x64xf32, #tpu.memory_space<vmem>>, %arg2: memref<2x1x32xf32, #tpu.memory_space<vmem>>, %arg3: memref<3x64x64xbf16, #tpu.memory_space<vmem>>, %arg4: memref<3x1x64xf32, #tpu.memory_space<vmem>>, %arg5: memref<64x64xbf16, #tpu.memory_space<vmem>>, %arg6: memref<1x64xf32, #tpu.memory_space<vmem>>, %arg7: memref<1x64xf32, #tpu.memory_space<vmem>>, %arg8: memref<1x64xf32, #tpu.memory_space<vmem>>, %arg9: memref<64x128xbf16, #tpu.memory_space<vmem>>, %arg10: memref<1x128xf32, #tpu.memory_space<vmem>>, %arg11: memref<128x64xbf16, #tpu.memory_space<vmem>>, %arg12: memref<1x64xf32, #tpu.memory_space<vmem>>, %arg13: memref<1x64xf32, #tpu.memory_space<vmem>>, %arg14: memref<1x64xf32, #tpu.memory_space<vmem>>, %arg15: memref<64x32xbf16, #tpu.memory_space<vmem>>, %arg16: memref<1x32xf32, #tpu.memory_space<vmem>>, %arg17: memref<32x64xbf16, #tpu.memory_space<vmem>>, %arg18: memref<32x64xbf16, #tpu.memory_space<vmem>>, %arg19: memref<1x64xf32, #tpu.memory_space<vmem>>, %arg20: memref<64x32xbf16, #tpu.memory_space<vmem>>, %arg21: memref<1x32xf32, #tpu.memory_space<vmem>>, %arg22: memref<32x128xbf16, #tpu.memory_space<vmem>>, %arg23: memref<1x128xf32, #tpu.memory_space<vmem>>, %arg24: memref<2x1x128xf32, #tpu.memory_space<vmem>>) attributes {dimension_semantics = [#tpu.dimension_semantics<parallel>], iteration_bounds = array<i64: 1>, scalar_prefetch = 0 : i64, scratch_operands = 0 : i64, tpu.core_type = #tpu.core_type<tc>, window_params = [{transform_indices = @transform_0, window_bounds = array<i64: 2, 8, 64>}, {transform_indices = @transform_1, window_bounds = array<i64: 2, 1, 32>}, {pipeline_mode = #tpu.pipeline_mode<synchronous>, transform_indices = @transform_2, window_bounds = array<i64: 3, 64, 64>}, {pipeline_mode = #tpu.pipeline_mode<synchronous>, transform_indices = @transform_3, window_bounds = array<i64: 3, 1, 64>}, {pipeline_mode = #tpu.pipeline_mode<synchronous>, transform_indices = @transform_4, window_bounds = array<i64: 64, 64>}, {pipeline_mode = #tpu.pipeline_mode<synchronous>, transform_indices = @transform_5, window_bounds = array<i64: 1, 64>}, {pipeline_mode = #tpu.pipeline_mode<synchronous>, transform_indices = @transform_6, window_bounds = array<i64: 1, 64>}, {pipeline_mode = #tpu.pipeline_mode<synchronous>, transform_indices = @transform_7, window_bounds = array<i64: 1, 64>}, {pipeline_mode = #tpu.pipeline_mode<synchronous>, transform_indices = @transform_8, window_bounds = array<i64: 64, 128>}, {pipeline_mode = #tpu.pipeline_mode<synchronous>, transform_indices = @transform_9, window_bounds = array<i64: 1, 128>}, {pipeline_mode = #tpu.pipeline_mode<synchronous>, transform_indices = @transform_10, window_bounds = array<i64: 128, 64>}, {pipeline_mode = #tpu.pipeline_mode<synchronous>, transform_indices = @transform_11, window_bounds = array<i64: 1, 64>}, {pipeline_mode = #tpu.pipeline_mode<synchronous>, transform_indices = @transform_12, window_bounds = array<i64: 1, 64>}, {pipeline_mode = #tpu.pipeline_mode<synchronous>, transform_indices = @transform_13, window_bounds = array<i64: 1, 64>}, {pipeline_mode = #tpu.pipeline_mode<synchronous>, transform_indices = @transform_14, window_bounds = array<i64: 64, 32>}, {pipeline_mode = #tpu.pipeline_mode<synchronous>, transform_indices = @transform_15, window_bounds = array<i64: 1, 32>}, {pipeline_mode = #tpu.pipeline_mode<synchronous>, transform_indices = @transform_16, window_bounds = array<i64: 32, 64>}, {pipeline_mode = #tpu.pipeline_mode<synchronous>, transform_indices = @transform_17, window_bounds = array<i64: 32, 64>}, {pipeline_mode = #tpu.pipeline_mode<synchronous>, transform_indices = @transform_18, window_bounds = array<i64: 1, 64>}, {pipeline_mode = #tpu.pipeline_mode<synchronous>, transform_indices = @transform_19, window_bounds = array<i64: 64, 32>}, {pipeline_mode = #tpu.pipeline_mode<synchronous>, transform_indices = @transform_20, window_bounds = array<i64: 1, 32>}, {pipeline_mode = #tpu.pipeline_mode<synchronous>, transform_indices = @transform_21, window_bounds = array<i64: 32, 128>}, {pipeline_mode = #tpu.pipeline_mode<synchronous>, transform_indices = @transform_22, window_bounds = array<i64: 1, 128>}, {transform_indices = @transform_23, window_bounds = array<i64: 2, 1, 128>}]} {
    %c0 = arith.constant 0 : index
    %c0_0 = arith.constant 0 : index
    %c0_1 = arith.constant 0 : index
    %0 = vector.load %arg1[%c0, %c0_0, %c0_1] : memref<2x8x64xf32, #tpu.memory_space<vmem>>, vector<2x8x64xf32>
    %1 = vector.shape_cast %0 : vector<2x8x64xf32> to vector<16x64xf32>
    %2 = arith.truncf %1 : vector<16x64xf32> to vector<16x64xbf16>
    %c0_2 = arith.constant 0 : index
    %c0_3 = arith.constant 0 : index
    %c0_4 = arith.constant 0 : index
    %3 = vector.load %arg3[%c0_2, %c0_3, %c0_4] : memref<3x64x64xbf16, #tpu.memory_space<vmem>>, vector<1x64x64xbf16>
    %4 = vector.shape_cast %3 : vector<1x64x64xbf16> to vector<64x64xbf16>
    %cst = arith.constant dense<0.000000e+00> : vector<16x64xf32>
    %5 = tpu.matmul %2, %4, %cst {dimension_numbers = #tpu.dot_dimension_numbers<[1], [0], [0], [1], [0, 0, 1, 1], [], []>} : vector<16x64xbf16>, vector<64x64xbf16>, vector<16x64xf32> -> vector<16x64xf32>
    %c0_5 = arith.constant 0 : index
    %c0_6 = arith.constant 0 : index
    %c0_7 = arith.constant 0 : index
    %6 = vector.load %arg4[%c0_5, %c0_6, %c0_7] : memref<3x1x64xf32, #tpu.memory_space<vmem>>, vector<1x1x64xf32>
    %7 = vector.shape_cast %6 : vector<1x1x64xf32> to vector<1x64xf32>
    %8 = vector.broadcast %7 : vector<1x64xf32> to vector<16x64xf32>
    %9 = arith.addf %5, %8 : vector<16x64xf32>
    %c1 = arith.constant 1 : index
    %c0_8 = arith.constant 0 : index
    %c0_9 = arith.constant 0 : index
    %10 = vector.load %arg3[%c1, %c0_8, %c0_9] : memref<3x64x64xbf16, #tpu.memory_space<vmem>>, vector<1x64x64xbf16>
    %11 = vector.shape_cast %10 : vector<1x64x64xbf16> to vector<64x64xbf16>
    %cst_10 = arith.constant dense<0.000000e+00> : vector<16x64xf32>
    %12 = tpu.matmul %2, %11, %cst_10 {dimension_numbers = #tpu.dot_dimension_numbers<[1], [0], [0], [1], [0, 0, 1, 1], [], []>} : vector<16x64xbf16>, vector<64x64xbf16>, vector<16x64xf32> -> vector<16x64xf32>
    %c1_11 = arith.constant 1 : index
    %c0_12 = arith.constant 0 : index
    %c0_13 = arith.constant 0 : index
    %13 = vector.load %arg4[%c1_11, %c0_12, %c0_13] : memref<3x1x64xf32, #tpu.memory_space<vmem>>, vector<1x1x64xf32>
    %14 = vector.shape_cast %13 : vector<1x1x64xf32> to vector<1x64xf32>
    %15 = vector.broadcast %14 : vector<1x64xf32> to vector<16x64xf32>
    %16 = arith.addf %12, %15 : vector<16x64xf32>
    %c2 = arith.constant 2 : index
    %c0_14 = arith.constant 0 : index
    %c0_15 = arith.constant 0 : index
    %17 = vector.load %arg3[%c2, %c0_14, %c0_15] : memref<3x64x64xbf16, #tpu.memory_space<vmem>>, vector<1x64x64xbf16>
    %18 = vector.shape_cast %17 : vector<1x64x64xbf16> to vector<64x64xbf16>
    %cst_16 = arith.constant dense<0.000000e+00> : vector<16x64xf32>
    %19 = tpu.matmul %2, %18, %cst_16 {dimension_numbers = #tpu.dot_dimension_numbers<[1], [0], [0], [1], [0, 0, 1, 1], [], []>} : vector<16x64xbf16>, vector<64x64xbf16>, vector<16x64xf32> -> vector<16x64xf32>
    %c2_17 = arith.constant 2 : index
    %c0_18 = arith.constant 0 : index
    %c0_19 = arith.constant 0 : index
    %20 = vector.load %arg4[%c2_17, %c0_18, %c0_19] : memref<3x1x64xf32, #tpu.memory_space<vmem>>, vector<1x1x64xf32>
    %21 = vector.shape_cast %20 : vector<1x1x64xf32> to vector<1x64xf32>
    %22 = vector.broadcast %21 : vector<1x64xf32> to vector<16x64xf32>
    %23 = arith.addf %19, %22 : vector<16x64xf32>
    %24 = vector.shape_cast %9 : vector<16x64xf32> to vector<2x8x64xf32>
    %25 = arith.truncf %24 : vector<2x8x64xf32> to vector<2x8x64xbf16>
    %26 = vector.shape_cast %16 : vector<16x64xf32> to vector<2x8x64xf32>
    %27 = arith.truncf %26 : vector<2x8x64xf32> to vector<2x8x64xbf16>
    %28 = vector.shape_cast %23 : vector<16x64xf32> to vector<2x8x64xf32>
    %29 = arith.truncf %28 : vector<2x8x64xf32> to vector<2x8x64xbf16>
    %c0_20 = arith.constant 0 : index
    %c0_21 = arith.constant 0 : index
    %30 = vector.load %arg5[%c0_20, %c0_21] : memref<64x64xbf16, #tpu.memory_space<vmem>>, vector<64x64xbf16>
    %cst_22 = arith.constant 0.000000e+00 : f32
    %31 = vector.broadcast %cst_22 : f32 to vector<2x8x64xf32>
    %32 = vector.extract_strided_slice %25 {offsets = [0, 0, 0], sizes = [2, 8, 16], strides = [1, 1, 1]} : vector<2x8x64xbf16> to vector<2x8x16xbf16>
    %33 = vector.extract_strided_slice %27 {offsets = [0, 0, 0], sizes = [2, 8, 16], strides = [1, 1, 1]} : vector<2x8x64xbf16> to vector<2x8x16xbf16>
    %34 = vector.extract_strided_slice %29 {offsets = [0, 0, 0], sizes = [2, 8, 16], strides = [1, 1, 1]} : vector<2x8x64xbf16> to vector<2x8x16xbf16>
    "tpu.trace_start"() <{level = 10 : i32, message = "bqd,bkd->bqk"}> : () -> ()
    %cst_23 = arith.constant dense<0.000000e+00> : vector<2x8x8xf32>
    %35 = tpu.matmul %32, %33, %cst_23 {dimension_numbers = #tpu.dot_dimension_numbers<[2], [2], [1], [1], [0, 0, 0, 1, 1, 1], [0], [0]>} : vector<2x8x16xbf16>, vector<2x8x16xbf16>, vector<2x8x8xf32> -> vector<2x8x8xf32>
    "tpu.trace_stop"() : () -> ()
    %cst_24 = arith.constant dense<0xFF800000> : vector<2x8xf32>
    %36 = vector.multi_reduction <maximumf>, %35, %cst_24 [2] : vector<2x8x8xf32> to vector<2x8xf32>
    %37 = vector.shape_cast %36 : vector<2x8xf32> to vector<2x8x1xf32>
    %38 = vector.broadcast %37 : vector<2x8x1xf32> to vector<2x8x8xf32>
    %39 = arith.subf %35, %38 : vector<2x8x8xf32>
    %40 = math.exp %39 : vector<2x8x8xf32>
    %cst_25 = arith.constant dense<0.000000e+00> : vector<2x8xf32>
    %41 = vector.multi_reduction <add>, %40, %cst_25 [2] : vector<2x8x8xf32> to vector<2x8xf32>
    %42 = vector.shape_cast %41 : vector<2x8xf32> to vector<2x8x1xf32>
    %43 = tpu.reciprocal %42 {approx = true} : vector<2x8x1xf32> -> vector<2x8x1xf32>
    %44 = vector.broadcast %43 : vector<2x8x1xf32> to vector<2x8x8xf32>
    %45 = arith.mulf %40, %44 : vector<2x8x8xf32>
    %46 = arith.truncf %45 : vector<2x8x8xf32> to vector<2x8x8xbf16>
    "tpu.trace_start"() <{level = 10 : i32, message = "bqk,bkd->bqd"}> : () -> ()
    %cst_26 = arith.constant dense<0.000000e+00> : vector<2x8x16xf32>
    %47 = tpu.matmul %46, %34, %cst_26 {dimension_numbers = #tpu.dot_dimension_numbers<[2], [1], [1], [2], [0, 0, 0, 1, 1, 2], [0], [0]>} : vector<2x8x8xbf16>, vector<2x8x16xbf16>, vector<2x8x16xf32> -> vector<2x8x16xf32>
    "tpu.trace_stop"() : () -> ()
    %48 = arith.truncf %47 : vector<2x8x16xf32> to vector<2x8x16xbf16>
    %49 = vector.extract_strided_slice %30 {offsets = [0, 0], sizes = [16, 64], strides = [1, 1]} : vector<64x64xbf16> to vector<16x64xbf16>
    "tpu.trace_start"() <{level = 10 : i32, message = "bqd,dh->bqh"}> : () -> ()
    %cst_27 = arith.constant dense<0.000000e+00> : vector<2x8x64xf32>
    %50 = tpu.matmul %48, %49, %cst_27 {dimension_numbers = #tpu.dot_dimension_numbers<[2], [0], [0, 1], [1], [0, 0, 0, 1, 1, 1], [], []>} : vector<2x8x16xbf16>, vector<16x64xbf16>, vector<2x8x64xf32> -> vector<2x8x64xf32>
    "tpu.trace_stop"() : () -> ()
    %51 = arith.addf %31, %50 : vector<2x8x64xf32>
    %52 = vector.extract_strided_slice %25 {offsets = [0, 0, 16], sizes = [2, 8, 16], strides = [1, 1, 1]} : vector<2x8x64xbf16> to vector<2x8x16xbf16>
    %53 = vector.extract_strided_slice %27 {offsets = [0, 0, 16], sizes = [2, 8, 16], strides = [1, 1, 1]} : vector<2x8x64xbf16> to vector<2x8x16xbf16>
    %54 = vector.extract_strided_slice %29 {offsets = [0, 0, 16], sizes = [2, 8, 16], strides = [1, 1, 1]} : vector<2x8x64xbf16> to vector<2x8x16xbf16>
    "tpu.trace_start"() <{level = 10 : i32, message = "bqd,bkd->bqk"}> : () -> ()
    %cst_28 = arith.constant dense<0.000000e+00> : vector<2x8x8xf32>
    %55 = tpu.matmul %52, %53, %cst_28 {dimension_numbers = #tpu.dot_dimension_numbers<[2], [2], [1], [1], [0, 0, 0, 1, 1, 1], [0], [0]>} : vector<2x8x16xbf16>, vector<2x8x16xbf16>, vector<2x8x8xf32> -> vector<2x8x8xf32>
    "tpu.trace_stop"() : () -> ()
    %cst_29 = arith.constant dense<0xFF800000> : vector<2x8xf32>
    %56 = vector.multi_reduction <maximumf>, %55, %cst_29 [2] : vector<2x8x8xf32> to vector<2x8xf32>
    %57 = vector.shape_cast %56 : vector<2x8xf32> to vector<2x8x1xf32>
    %58 = vector.broadcast %57 : vector<2x8x1xf32> to vector<2x8x8xf32>
    %59 = arith.subf %55, %58 : vector<2x8x8xf32>
    %60 = math.exp %59 : vector<2x8x8xf32>
    %cst_30 = arith.constant dense<0.000000e+00> : vector<2x8xf32>
    %61 = vector.multi_reduction <add>, %60, %cst_30 [2] : vector<2x8x8xf32> to vector<2x8xf32>
    %62 = vector.shape_cast %61 : vector<2x8xf32> to vector<2x8x1xf32>
    %63 = tpu.reciprocal %62 {approx = true} : vector<2x8x1xf32> -> vector<2x8x1xf32>
    %64 = vector.broadcast %63 : vector<2x8x1xf32> to vector<2x8x8xf32>
    %65 = arith.mulf %60, %64 : vector<2x8x8xf32>
    %66 = arith.truncf %65 : vector<2x8x8xf32> to vector<2x8x8xbf16>
    "tpu.trace_start"() <{level = 10 : i32, message = "bqk,bkd->bqd"}> : () -> ()
    %cst_31 = arith.constant dense<0.000000e+00> : vector<2x8x16xf32>
    %67 = tpu.matmul %66, %54, %cst_31 {dimension_numbers = #tpu.dot_dimension_numbers<[2], [1], [1], [2], [0, 0, 0, 1, 1, 2], [0], [0]>} : vector<2x8x8xbf16>, vector<2x8x16xbf16>, vector<2x8x16xf32> -> vector<2x8x16xf32>
    "tpu.trace_stop"() : () -> ()
    %68 = arith.truncf %67 : vector<2x8x16xf32> to vector<2x8x16xbf16>
    %69 = vector.extract_strided_slice %30 {offsets = [16, 0], sizes = [16, 64], strides = [1, 1]} : vector<64x64xbf16> to vector<16x64xbf16>
    "tpu.trace_start"() <{level = 10 : i32, message = "bqd,dh->bqh"}> : () -> ()
    %cst_32 = arith.constant dense<0.000000e+00> : vector<2x8x64xf32>
    %70 = tpu.matmul %68, %69, %cst_32 {dimension_numbers = #tpu.dot_dimension_numbers<[2], [0], [0, 1], [1], [0, 0, 0, 1, 1, 1], [], []>} : vector<2x8x16xbf16>, vector<16x64xbf16>, vector<2x8x64xf32> -> vector<2x8x64xf32>
    "tpu.trace_stop"() : () -> ()
    %71 = arith.addf %51, %70 : vector<2x8x64xf32>
    %72 = vector.extract_strided_slice %25 {offsets = [0, 0, 32], sizes = [2, 8, 16], strides = [1, 1, 1]} : vector<2x8x64xbf16> to vector<2x8x16xbf16>
    %73 = vector.extract_strided_slice %27 {offsets = [0, 0, 32], sizes = [2, 8, 16], strides = [1, 1, 1]} : vector<2x8x64xbf16> to vector<2x8x16xbf16>
    %74 = vector.extract_strided_slice %29 {offsets = [0, 0, 32], sizes = [2, 8, 16], strides = [1, 1, 1]} : vector<2x8x64xbf16> to vector<2x8x16xbf16>
    "tpu.trace_start"() <{level = 10 : i32, message = "bqd,bkd->bqk"}> : () -> ()
    %cst_33 = arith.constant dense<0.000000e+00> : vector<2x8x8xf32>
    %75 = tpu.matmul %72, %73, %cst_33 {dimension_numbers = #tpu.dot_dimension_numbers<[2], [2], [1], [1], [0, 0, 0, 1, 1, 1], [0], [0]>} : vector<2x8x16xbf16>, vector<2x8x16xbf16>, vector<2x8x8xf32> -> vector<2x8x8xf32>
    "tpu.trace_stop"() : () -> ()
    %cst_34 = arith.constant dense<0xFF800000> : vector<2x8xf32>
    %76 = vector.multi_reduction <maximumf>, %75, %cst_34 [2] : vector<2x8x8xf32> to vector<2x8xf32>
    %77 = vector.shape_cast %76 : vector<2x8xf32> to vector<2x8x1xf32>
    %78 = vector.broadcast %77 : vector<2x8x1xf32> to vector<2x8x8xf32>
    %79 = arith.subf %75, %78 : vector<2x8x8xf32>
    %80 = math.exp %79 : vector<2x8x8xf32>
    %cst_35 = arith.constant dense<0.000000e+00> : vector<2x8xf32>
    %81 = vector.multi_reduction <add>, %80, %cst_35 [2] : vector<2x8x8xf32> to vector<2x8xf32>
    %82 = vector.shape_cast %81 : vector<2x8xf32> to vector<2x8x1xf32>
    %83 = tpu.reciprocal %82 {approx = true} : vector<2x8x1xf32> -> vector<2x8x1xf32>
    %84 = vector.broadcast %83 : vector<2x8x1xf32> to vector<2x8x8xf32>
    %85 = arith.mulf %80, %84 : vector<2x8x8xf32>
    %86 = arith.truncf %85 : vector<2x8x8xf32> to vector<2x8x8xbf16>
    "tpu.trace_start"() <{level = 10 : i32, message = "bqk,bkd->bqd"}> : () -> ()
    %cst_36 = arith.constant dense<0.000000e+00> : vector<2x8x16xf32>
    %87 = tpu.matmul %86, %74, %cst_36 {dimension_numbers = #tpu.dot_dimension_numbers<[2], [1], [1], [2], [0, 0, 0, 1, 1, 2], [0], [0]>} : vector<2x8x8xbf16>, vector<2x8x16xbf16>, vector<2x8x16xf32> -> vector<2x8x16xf32>
    "tpu.trace_stop"() : () -> ()
    %88 = arith.truncf %87 : vector<2x8x16xf32> to vector<2x8x16xbf16>
    %89 = vector.extract_strided_slice %30 {offsets = [32, 0], sizes = [16, 64], strides = [1, 1]} : vector<64x64xbf16> to vector<16x64xbf16>
    "tpu.trace_start"() <{level = 10 : i32, message = "bqd,dh->bqh"}> : () -> ()
    %cst_37 = arith.constant dense<0.000000e+00> : vector<2x8x64xf32>
    %90 = tpu.matmul %88, %89, %cst_37 {dimension_numbers = #tpu.dot_dimension_numbers<[2], [0], [0, 1], [1], [0, 0, 0, 1, 1, 1], [], []>} : vector<2x8x16xbf16>, vector<16x64xbf16>, vector<2x8x64xf32> -> vector<2x8x64xf32>
    "tpu.trace_stop"() : () -> ()
    %91 = arith.addf %71, %90 : vector<2x8x64xf32>
    %92 = vector.extract_strided_slice %25 {offsets = [0, 0, 48], sizes = [2, 8, 16], strides = [1, 1, 1]} : vector<2x8x64xbf16> to vector<2x8x16xbf16>
    %93 = vector.extract_strided_slice %27 {offsets = [0, 0, 48], sizes = [2, 8, 16], strides = [1, 1, 1]} : vector<2x8x64xbf16> to vector<2x8x16xbf16>
    %94 = vector.extract_strided_slice %29 {offsets = [0, 0, 48], sizes = [2, 8, 16], strides = [1, 1, 1]} : vector<2x8x64xbf16> to vector<2x8x16xbf16>
    "tpu.trace_start"() <{level = 10 : i32, message = "bqd,bkd->bqk"}> : () -> ()
    %cst_38 = arith.constant dense<0.000000e+00> : vector<2x8x8xf32>
    %95 = tpu.matmul %92, %93, %cst_38 {dimension_numbers = #tpu.dot_dimension_numbers<[2], [2], [1], [1], [0, 0, 0, 1, 1, 1], [0], [0]>} : vector<2x8x16xbf16>, vector<2x8x16xbf16>, vector<2x8x8xf32> -> vector<2x8x8xf32>
    "tpu.trace_stop"() : () -> ()
    %cst_39 = arith.constant dense<0xFF800000> : vector<2x8xf32>
    %96 = vector.multi_reduction <maximumf>, %95, %cst_39 [2] : vector<2x8x8xf32> to vector<2x8xf32>
    %97 = vector.shape_cast %96 : vector<2x8xf32> to vector<2x8x1xf32>
    %98 = vector.broadcast %97 : vector<2x8x1xf32> to vector<2x8x8xf32>
    %99 = arith.subf %95, %98 : vector<2x8x8xf32>
    %100 = math.exp %99 : vector<2x8x8xf32>
    %cst_40 = arith.constant dense<0.000000e+00> : vector<2x8xf32>
    %101 = vector.multi_reduction <add>, %100, %cst_40 [2] : vector<2x8x8xf32> to vector<2x8xf32>
    %102 = vector.shape_cast %101 : vector<2x8xf32> to vector<2x8x1xf32>
    %103 = tpu.reciprocal %102 {approx = true} : vector<2x8x1xf32> -> vector<2x8x1xf32>
    %104 = vector.broadcast %103 : vector<2x8x1xf32> to vector<2x8x8xf32>
    %105 = arith.mulf %100, %104 : vector<2x8x8xf32>
    %106 = arith.truncf %105 : vector<2x8x8xf32> to vector<2x8x8xbf16>
    "tpu.trace_start"() <{level = 10 : i32, message = "bqk,bkd->bqd"}> : () -> ()
    %cst_41 = arith.constant dense<0.000000e+00> : vector<2x8x16xf32>
    %107 = tpu.matmul %106, %94, %cst_41 {dimension_numbers = #tpu.dot_dimension_numbers<[2], [1], [1], [2], [0, 0, 0, 1, 1, 2], [0], [0]>} : vector<2x8x8xbf16>, vector<2x8x16xbf16>, vector<2x8x16xf32> -> vector<2x8x16xf32>
    "tpu.trace_stop"() : () -> ()
    %108 = arith.truncf %107 : vector<2x8x16xf32> to vector<2x8x16xbf16>
    %109 = vector.extract_strided_slice %30 {offsets = [48, 0], sizes = [16, 64], strides = [1, 1]} : vector<64x64xbf16> to vector<16x64xbf16>
    "tpu.trace_start"() <{level = 10 : i32, message = "bqd,dh->bqh"}> : () -> ()
    %cst_42 = arith.constant dense<0.000000e+00> : vector<2x8x64xf32>
    %110 = tpu.matmul %108, %109, %cst_42 {dimension_numbers = #tpu.dot_dimension_numbers<[2], [0], [0, 1], [1], [0, 0, 0, 1, 1, 1], [], []>} : vector<2x8x16xbf16>, vector<16x64xbf16>, vector<2x8x64xf32> -> vector<2x8x64xf32>
    "tpu.trace_stop"() : () -> ()
    %111 = arith.addf %91, %110 : vector<2x8x64xf32>
    %112 = vector.shape_cast %111 : vector<2x8x64xf32> to vector<16x64xf32>
    %c0_43 = arith.constant 0 : index
    %c0_44 = arith.constant 0 : index
    %113 = vector.load %arg6[%c0_43, %c0_44] : memref<1x64xf32, #tpu.memory_space<vmem>>, vector<1x64xf32>
    %114 = vector.broadcast %113 : vector<1x64xf32> to vector<16x64xf32>
    %115 = arith.addf %112, %114 : vector<16x64xf32>
    %116 = arith.addf %1, %115 : vector<16x64xf32>
    %cst_45 = arith.constant dense<0.000000e+00> : vector<16xf32>
    %117 = vector.multi_reduction <add>, %116, %cst_45 [1] : vector<16x64xf32> to vector<16xf32>
    %118 = vector.shape_cast %117 : vector<16xf32> to vector<16x1xf32>
    %cst_46 = arith.constant 6.400000e+01 : f32
    %119 = vector.broadcast %cst_46 : f32 to vector<16x1xf32>
    %120 = arith.divf %118, %119 : vector<16x1xf32>
    %121 = vector.broadcast %120 : vector<16x1xf32> to vector<16x64xf32>
    %122 = arith.subf %116, %121 : vector<16x64xf32>
    %123 = arith.mulf %122, %122 : vector<16x64xf32>
    %cst_47 = arith.constant dense<0.000000e+00> : vector<16xf32>
    %124 = vector.multi_reduction <add>, %123, %cst_47 [1] : vector<16x64xf32> to vector<16xf32>
    %125 = vector.shape_cast %124 : vector<16xf32> to vector<16x1xf32>
    %cst_48 = arith.constant 6.400000e+01 : f32
    %126 = vector.broadcast %cst_48 : f32 to vector<16x1xf32>
    %127 = arith.divf %125, %126 : vector<16x1xf32>
    %128 = vector.broadcast %120 : vector<16x1xf32> to vector<16x64xf32>
    %129 = arith.subf %116, %128 : vector<16x64xf32>
    %cst_49 = arith.constant 9.99999996E-13 : f32
    %130 = vector.broadcast %cst_49 : f32 to vector<16x1xf32>
    %131 = arith.addf %127, %130 : vector<16x1xf32>
    %132 = math.rsqrt %131 : vector<16x1xf32>
    %133 = vector.broadcast %132 : vector<16x1xf32> to vector<16x64xf32>
    %134 = arith.mulf %129, %133 : vector<16x64xf32>
    %c0_50 = arith.constant 0 : index
    %c0_51 = arith.constant 0 : index
    %135 = vector.load %arg7[%c0_50, %c0_51] : memref<1x64xf32, #tpu.memory_space<vmem>>, vector<1x64xf32>
    %136 = vector.broadcast %135 : vector<1x64xf32> to vector<16x64xf32>
    %137 = arith.mulf %134, %136 : vector<16x64xf32>
    %c0_52 = arith.constant 0 : index
    %c0_53 = arith.constant 0 : index
    %138 = vector.load %arg8[%c0_52, %c0_53] : memref<1x64xf32, #tpu.memory_space<vmem>>, vector<1x64xf32>
    %139 = vector.broadcast %138 : vector<1x64xf32> to vector<16x64xf32>
    %140 = arith.addf %137, %139 : vector<16x64xf32>
    %141 = arith.truncf %140 : vector<16x64xf32> to vector<16x64xbf16>
    %c0_54 = arith.constant 0 : index
    %c0_55 = arith.constant 0 : index
    %142 = vector.load %arg9[%c0_54, %c0_55] : memref<64x128xbf16, #tpu.memory_space<vmem>>, vector<64x128xbf16>
    %cst_56 = arith.constant dense<0.000000e+00> : vector<16x128xf32>
    %143 = tpu.matmul %141, %142, %cst_56 {dimension_numbers = #tpu.dot_dimension_numbers<[1], [0], [0], [1], [0, 0, 1, 1], [], []>} : vector<16x64xbf16>, vector<64x128xbf16>, vector<16x128xf32> -> vector<16x128xf32>
    %c0_57 = arith.constant 0 : index
    %c0_58 = arith.constant 0 : index
    %144 = vector.load %arg10[%c0_57, %c0_58] : memref<1x128xf32, #tpu.memory_space<vmem>>, vector<1x128xf32>
    %145 = vector.broadcast %144 : vector<1x128xf32> to vector<16x128xf32>
    %146 = arith.addf %143, %145 : vector<16x128xf32>
    %147 = arith.mulf %146, %146 : vector<16x128xf32>
    %148 = arith.mulf %146, %147 : vector<16x128xf32>
    %cst_59 = arith.constant 4.471500e-02 : f32
    %149 = vector.broadcast %cst_59 : f32 to vector<16x128xf32>
    %150 = arith.mulf %149, %148 : vector<16x128xf32>
    %151 = arith.addf %146, %150 : vector<16x128xf32>
    %cst_60 = arith.constant 0.797884583 : f32
    %152 = vector.broadcast %cst_60 : f32 to vector<16x128xf32>
    %153 = arith.mulf %152, %151 : vector<16x128xf32>
    %154 = math.tanh %153 : vector<16x128xf32>
    %cst_61 = arith.constant 1.000000e+00 : f32
    %155 = vector.broadcast %cst_61 : f32 to vector<16x128xf32>
    %156 = arith.addf %155, %154 : vector<16x128xf32>
    %cst_62 = arith.constant 5.000000e-01 : f32
    %157 = vector.broadcast %cst_62 : f32 to vector<16x128xf32>
    %158 = arith.mulf %157, %156 : vector<16x128xf32>
    %159 = arith.mulf %146, %158 : vector<16x128xf32>
    %160 = arith.truncf %159 : vector<16x128xf32> to vector<16x128xbf16>
    %c0_63 = arith.constant 0 : index
    %c0_64 = arith.constant 0 : index
    %161 = vector.load %arg11[%c0_63, %c0_64] : memref<128x64xbf16, #tpu.memory_space<vmem>>, vector<128x64xbf16>
    %cst_65 = arith.constant dense<0.000000e+00> : vector<16x64xf32>
    %162 = tpu.matmul %160, %161, %cst_65 {dimension_numbers = #tpu.dot_dimension_numbers<[1], [0], [0], [1], [0, 0, 1, 1], [], []>} : vector<16x128xbf16>, vector<128x64xbf16>, vector<16x64xf32> -> vector<16x64xf32>
    %c0_66 = arith.constant 0 : index
    %c0_67 = arith.constant 0 : index
    %163 = vector.load %arg12[%c0_66, %c0_67] : memref<1x64xf32, #tpu.memory_space<vmem>>, vector<1x64xf32>
    %164 = vector.broadcast %163 : vector<1x64xf32> to vector<16x64xf32>
    %165 = arith.addf %162, %164 : vector<16x64xf32>
    %166 = arith.addf %140, %165 : vector<16x64xf32>
    %cst_68 = arith.constant dense<0.000000e+00> : vector<16xf32>
    %167 = vector.multi_reduction <add>, %166, %cst_68 [1] : vector<16x64xf32> to vector<16xf32>
    %168 = vector.shape_cast %167 : vector<16xf32> to vector<16x1xf32>
    %cst_69 = arith.constant 6.400000e+01 : f32
    %169 = vector.broadcast %cst_69 : f32 to vector<16x1xf32>
    %170 = arith.divf %168, %169 : vector<16x1xf32>
    %171 = vector.broadcast %170 : vector<16x1xf32> to vector<16x64xf32>
    %172 = arith.subf %166, %171 : vector<16x64xf32>
    %173 = arith.mulf %172, %172 : vector<16x64xf32>
    %cst_70 = arith.constant dense<0.000000e+00> : vector<16xf32>
    %174 = vector.multi_reduction <add>, %173, %cst_70 [1] : vector<16x64xf32> to vector<16xf32>
    %175 = vector.shape_cast %174 : vector<16xf32> to vector<16x1xf32>
    %cst_71 = arith.constant 6.400000e+01 : f32
    %176 = vector.broadcast %cst_71 : f32 to vector<16x1xf32>
    %177 = arith.divf %175, %176 : vector<16x1xf32>
    %178 = vector.broadcast %170 : vector<16x1xf32> to vector<16x64xf32>
    %179 = arith.subf %166, %178 : vector<16x64xf32>
    %cst_72 = arith.constant 9.99999996E-13 : f32
    %180 = vector.broadcast %cst_72 : f32 to vector<16x1xf32>
    %181 = arith.addf %177, %180 : vector<16x1xf32>
    %182 = math.rsqrt %181 : vector<16x1xf32>
    %183 = vector.broadcast %182 : vector<16x1xf32> to vector<16x64xf32>
    %184 = arith.mulf %179, %183 : vector<16x64xf32>
    %c0_73 = arith.constant 0 : index
    %c0_74 = arith.constant 0 : index
    %185 = vector.load %arg13[%c0_73, %c0_74] : memref<1x64xf32, #tpu.memory_space<vmem>>, vector<1x64xf32>
    %186 = vector.broadcast %185 : vector<1x64xf32> to vector<16x64xf32>
    %187 = arith.mulf %184, %186 : vector<16x64xf32>
    %c0_75 = arith.constant 0 : index
    %c0_76 = arith.constant 0 : index
    %188 = vector.load %arg14[%c0_75, %c0_76] : memref<1x64xf32, #tpu.memory_space<vmem>>, vector<1x64xf32>
    %189 = vector.broadcast %188 : vector<1x64xf32> to vector<16x64xf32>
    %190 = arith.addf %187, %189 : vector<16x64xf32>
    %191 = vector.shape_cast %190 : vector<16x64xf32> to vector<2x8x64xf32>
    %192 = vector.extract_strided_slice %191 {offsets = [0, 0, 0], sizes = [2, 1, 64], strides = [1, 1, 1]} : vector<2x8x64xf32> to vector<2x1x64xf32>
    %193 = vector.shape_cast %192 : vector<2x1x64xf32> to vector<2x64xf32>
    %c0_77 = arith.constant 0 : index
    %c0_78 = arith.constant 0 : index
    %c0_79 = arith.constant 0 : index
    %194 = vector.load %arg2[%c0_77, %c0_78, %c0_79] : memref<2x1x32xf32, #tpu.memory_space<vmem>>, vector<2x1x32xf32>
    %195 = vector.shape_cast %194 : vector<2x1x32xf32> to vector<2x32xf32>
    %196 = arith.truncf %195 : vector<2x32xf32> to vector<2x32xbf16>
    %197 = arith.truncf %193 : vector<2x64xf32> to vector<2x64xbf16>
    %c0_80 = arith.constant 0 : index
    %c0_81 = arith.constant 0 : index
    %198 = vector.load %arg15[%c0_80, %c0_81] : memref<64x32xbf16, #tpu.memory_space<vmem>>, vector<64x32xbf16>
    %cst_82 = arith.constant dense<0.000000e+00> : vector<2x32xf32>
    %199 = tpu.matmul %197, %198, %cst_82 {dimension_numbers = #tpu.dot_dimension_numbers<[1], [0], [0], [1], [0, 0, 1, 1], [], []>} : vector<2x64xbf16>, vector<64x32xbf16>, vector<2x32xf32> -> vector<2x32xf32>
    %c0_83 = arith.constant 0 : index
    %c0_84 = arith.constant 0 : index
    %200 = vector.load %arg16[%c0_83, %c0_84] : memref<1x32xf32, #tpu.memory_space<vmem>>, vector<1x32xf32>
    %201 = vector.broadcast %200 : vector<1x32xf32> to vector<2x32xf32>
    %202 = arith.addf %199, %201 : vector<2x32xf32>
    %c0_85 = arith.constant 0 : index
    %c0_86 = arith.constant 0 : index
    %203 = vector.load %arg17[%c0_85, %c0_86] : memref<32x64xbf16, #tpu.memory_space<vmem>>, vector<32x64xbf16>
    %cst_87 = arith.constant dense<0.000000e+00> : vector<2x64xf32>
    %204 = tpu.matmul %196, %203, %cst_87 {dimension_numbers = #tpu.dot_dimension_numbers<[1], [0], [0], [1], [0, 0, 1, 1], [], []>} : vector<2x32xbf16>, vector<32x64xbf16>, vector<2x64xf32> -> vector<2x64xf32>
    %205 = arith.truncf %202 : vector<2x32xf32> to vector<2x32xbf16>
    %c0_88 = arith.constant 0 : index
    %c0_89 = arith.constant 0 : index
    %206 = vector.load %arg18[%c0_88, %c0_89] : memref<32x64xbf16, #tpu.memory_space<vmem>>, vector<32x64xbf16>
    %cst_90 = arith.constant dense<0.000000e+00> : vector<2x64xf32>
    %207 = tpu.matmul %205, %206, %cst_90 {dimension_numbers = #tpu.dot_dimension_numbers<[1], [0], [0], [1], [0, 0, 1, 1], [], []>} : vector<2x32xbf16>, vector<32x64xbf16>, vector<2x64xf32> -> vector<2x64xf32>
    %208 = arith.addf %204, %207 : vector<2x64xf32>
    %c0_91 = arith.constant 0 : index
    %c0_92 = arith.constant 0 : index
    %209 = vector.load %arg19[%c0_91, %c0_92] : memref<1x64xf32, #tpu.memory_space<vmem>>, vector<1x64xf32>
    %210 = vector.broadcast %209 : vector<1x64xf32> to vector<2x64xf32>
    %211 = arith.addf %208, %210 : vector<2x64xf32>
    %cst_93 = arith.constant 0.000000e+00 : f32
    %212 = vector.broadcast %cst_93 : f32 to vector<2x64xf32>
    %213 = arith.maximumf %211, %212 : vector<2x64xf32>
    %c0_94 = arith.constant 0 : index
    %c0_95 = arith.constant 0 : index
    %214 = vector.load %arg20[%c0_94, %c0_95] : memref<64x32xbf16, #tpu.memory_space<vmem>>, vector<64x32xbf16>
    %c0_96 = arith.constant 0 : index
    %c0_97 = arith.constant 0 : index
    %215 = vector.load %arg21[%c0_96, %c0_97] : memref<1x32xf32, #tpu.memory_space<vmem>>, vector<1x32xf32>
    %216 = arith.truncf %213 : vector<2x64xf32> to vector<2x64xbf16>
    %cst_98 = arith.constant dense<0.000000e+00> : vector<2x32xf32>
    %217 = tpu.matmul %216, %214, %cst_98 {dimension_numbers = #tpu.dot_dimension_numbers<[1], [0], [0], [1], [0, 0, 1, 1], [], []>} : vector<2x64xbf16>, vector<64x32xbf16>, vector<2x32xf32> -> vector<2x32xf32>
    %218 = vector.broadcast %215 : vector<1x32xf32> to vector<2x32xf32>
    %219 = arith.addf %217, %218 : vector<2x32xf32>
    %cst_99 = arith.constant 0.000000e+00 : f32
    %220 = vector.broadcast %cst_99 : f32 to vector<2x32xf32>
    %221 = arith.maximumf %219, %220 : vector<2x32xf32>
    %c0_100 = arith.constant 0 : index
    %c0_101 = arith.constant 0 : index
    %222 = vector.load %arg22[%c0_100, %c0_101] : memref<32x128xbf16, #tpu.memory_space<vmem>>, vector<32x128xbf16>
    %c0_102 = arith.constant 0 : index
    %c0_103 = arith.constant 0 : index
    %223 = vector.load %arg23[%c0_102, %c0_103] : memref<1x128xf32, #tpu.memory_space<vmem>>, vector<1x128xf32>
    %224 = arith.truncf %221 : vector<2x32xf32> to vector<2x32xbf16>
    %cst_104 = arith.constant dense<0.000000e+00> : vector<2x128xf32>
    %225 = tpu.matmul %224, %222, %cst_104 {dimension_numbers = #tpu.dot_dimension_numbers<[1], [0], [0], [1], [0, 0, 1, 1], [], []>} : vector<2x32xbf16>, vector<32x128xbf16>, vector<2x128xf32> -> vector<2x128xf32>
    %226 = vector.broadcast %223 : vector<1x128xf32> to vector<2x128xf32>
    %227 = arith.addf %225, %226 : vector<2x128xf32>
    %228 = vector.shape_cast %227 : vector<2x128xf32> to vector<2x1x128xf32>
    %c0_105 = arith.constant 0 : index
    %c0_106 = arith.constant 0 : index
    %c0_107 = arith.constant 0 : index
    %229 = vector.load %arg24[%c0_105, %c0_106, %c0_107] : memref<2x1x128xf32, #tpu.memory_space<vmem>>, vector<2x1x128xf32>
    tpu.vector_store %arg24[%c0_105, %c0_106, %c0_107], %228 {strides = array<i32>} : memref<2x1x128xf32, #tpu.memory_space<vmem>>, vector<2x1x128xf32>,
    return
  }
  func.func @transform_0(%arg0: i32) -> (i32, i32, i32) {
    %c0_i32 = arith.constant 0 : i32
    %c0_i32_0 = arith.constant 0 : i32
    %c0_i32_1 = arith.constant 0 : i32
    return %arg0, %c0_i32, %c0_i32_0 : i32, i32, i32
  }
  func.func @transform_1(%arg0: i32) -> (i32, i32, i32) {
    %c0_i32 = arith.constant 0 : i32
    %c0_i32_0 = arith.constant 0 : i32
    %c0_i32_1 = arith.constant 0 : i32
    return %arg0, %c0_i32, %c0_i32_0 : i32, i32, i32
  }
  func.func @transform_2(%arg0: i32) -> (i32, i32, i32) {
    %c0_i32 = arith.constant 0 : i32
    %c0_i32_0 = arith.constant 0 : i32
    %c0_i32_1 = arith.constant 0 : i32
    %c0_i32_2 = arith.constant 0 : i32
    return %c0_i32, %c0_i32_0, %c0_i32_1 : i32, i32, i32
  }
  func.func @transform_3(%arg0: i32) -> (i32, i32, i32) {
    %c0_i32 = arith.constant 0 : i32
    %c0_i32_0 = arith.constant 0 : i32
    %c0_i32_1 = arith.constant 0 : i32
    %c0_i32_2 = arith.constant 0 : i32
    return %c0_i32, %c0_i32_0, %c0_i32_1 : i32, i32, i32
  }
  func.func @transform_4(%arg0: i32) -> (i32, i32) {
    %c0_i32 = arith.constant 0 : i32
    %c0_i32_0 = arith.constant 0 : i32
    %c0_i32_1 = arith.constant 0 : i32
    return %c0_i32, %c0_i32_0 : i32, i32
  }
  func.func @transform_5(%arg0: i32) -> (i32, i32) {
    %c0_i32 = arith.constant 0 : i32
    %c0_i32_0 = arith.constant 0 : i32
    %c0_i32_1 = arith.constant 0 : i32
    return %c0_i32, %c0_i32_0 : i32, i32
  }
  func.func @transform_6(%arg0: i32) -> (i32, i32) {
    %c0_i32 = arith.constant 0 : i32
    %c0_i32_0 = arith.constant 0 : i32
    %c0_i32_1 = arith.constant 0 : i32
    return %c0_i32, %c0_i32_0 : i32, i32
  }
  func.func @transform_7(%arg0: i32) -> (i32, i32) {
    %c0_i32 = arith.constant 0 : i32
    %c0_i32_0 = arith.constant 0 : i32
    %c0_i32_1 = arith.constant 0 : i32
    return %c0_i32, %c0_i32_0 : i32, i32
  }
  func.func @transform_8(%arg0: i32) -> (i32, i32) {
    %c0_i32 = arith.constant 0 : i32
    %c0_i32_0 = arith.constant 0 : i32
    %c0_i32_1 = arith.constant 0 : i32
    return %c0_i32, %c0_i32_0 : i32, i32
  }
  func.func @transform_9(%arg0: i32) -> (i32, i32) {
    %c0_i32 = arith.constant 0 : i32
    %c0_i32_0 = arith.constant 0 : i32
    %c0_i32_1 = arith.constant 0 : i32
    return %c0_i32, %c0_i32_0 : i32, i32
  }
  func.func @transform_10(%arg0: i32) -> (i32, i32) {
    %c0_i32 = arith.constant 0 : i32
    %c0_i32_0 = arith.constant 0 : i32
    %c0_i32_1 = arith.constant 0 : i32
    return %c0_i32, %c0_i32_0 : i32, i32
  }
  func.func @transform_11(%arg0: i32) -> (i32, i32) {
    %c0_i32 = arith.constant 0 : i32
    %c0_i32_0 = arith.constant 0 : i32
    %c0_i32_1 = arith.constant 0 : i32
    return %c0_i32, %c0_i32_0 : i32, i32
  }
  func.func @transform_12(%arg0: i32) -> (i32, i32) {
    %c0_i32 = arith.constant 0 : i32
    %c0_i32_0 = arith.constant 0 : i32
    %c0_i32_1 = arith.constant 0 : i32
    return %c0_i32, %c0_i32_0 : i32, i32
  }
  func.func @transform_13(%arg0: i32) -> (i32, i32) {
    %c0_i32 = arith.constant 0 : i32
    %c0_i32_0 = arith.constant 0 : i32
    %c0_i32_1 = arith.constant 0 : i32
    return %c0_i32, %c0_i32_0 : i32, i32
  }
  func.func @transform_14(%arg0: i32) -> (i32, i32) {
    %c0_i32 = arith.constant 0 : i32
    %c0_i32_0 = arith.constant 0 : i32
    %c0_i32_1 = arith.constant 0 : i32
    return %c0_i32, %c0_i32_0 : i32, i32
  }
  func.func @transform_15(%arg0: i32) -> (i32, i32) {
    %c0_i32 = arith.constant 0 : i32
    %c0_i32_0 = arith.constant 0 : i32
    %c0_i32_1 = arith.constant 0 : i32
    return %c0_i32, %c0_i32_0 : i32, i32
  }
  func.func @transform_16(%arg0: i32) -> (i32, i32) {
    %c0_i32 = arith.constant 0 : i32
    %c0_i32_0 = arith.constant 0 : i32
    %c0_i32_1 = arith.constant 0 : i32
    return %c0_i32, %c0_i32_0 : i32, i32
  }
  func.func @transform_17(%arg0: i32) -> (i32, i32) {
    %c0_i32 = arith.constant 0 : i32
    %c0_i32_0 = arith.constant 0 : i32
    %c0_i32_1 = arith.constant 0 : i32
    return %c0_i32, %c0_i32_0 : i32, i32
  }
  func.func @transform_18(%arg0: i32) -> (i32, i32) {
    %c0_i32 = arith.constant 0 : i32
    %c0_i32_0 = arith.constant 0 : i32
    %c0_i32_1 = arith.constant 0 : i32
    return %c0_i32, %c0_i32_0 : i32, i32
  }
  func.func @transform_19(%arg0: i32) -> (i32, i32) {
    %c0_i32 = arith.constant 0 : i32
    %c0_i32_0 = arith.constant 0 : i32
    %c0_i32_1 = arith.constant 0 : i32
    return %c0_i32, %c0_i32_0 : i32, i32
  }
  func.func @transform_20(%arg0: i32) -> (i32, i32) {
    %c0_i32 = arith.constant 0 : i32
    %c0_i32_0 = arith.constant 0 : i32
    %c0_i32_1 = arith.constant 0 : i32
    return %c0_i32, %c0_i32_0 : i32, i32
  }
  func.func @transform_21(%arg0: i32) -> (i32, i32) {
    %c0_i32 = arith.constant 0 : i32
    %c0_i32_0 = arith.constant 0 : i32
    %c0_i32_1 = arith.constant 0 : i32
    return %c0_i32, %c0_i32_0 : i32, i32
  }
  func.func @transform_22(%arg0: i32) -> (i32, i32) {
    %c0_i32 = arith.constant 0 : i32
    %c0_i32_0 = arith.constant 0 : i32
    %c0_i32_1 = arith.constant 0 : i32
    return %c0_i32, %c0_i32_0 : i32, i32
  }
  func.func @transform_23(%arg0: i32) -> (i32, i32, i32) {
    %c0_i32 = arith.constant 0 : i32
    %c0_i32_0 = arith.constant 0 : i32
    %c0_i32_1 = arith.constant 0 : i32
    return %arg0, %c0_i32, %c0_i32_0 : i32, i32, i32
  }
}

</mosaic_0001>

<bundles_post_ra>
// kernel: wide_deep_ef_v1_forward.1
= control target key start
LH: loop header
LB: loop body
LE: loop exit
PB: predicated region body
PF: predicated region fallthrough
CT: control target
= control target key end

     0   :  { %s2682_s0 = inlined_call_operand.vmem [shape: f32[2,8,64], index: 0, kind: input, shape index: {}]   ;;  %s2683_s1 = inlined_call_operand.vmem [shape: f32[2,1,32], index: 1, kind: input, shape index: {}]   ;;  %s2684_s2 = inlined_call_operand.vmem [shape: bf16[3,64,64], index: 2, kind: input, shape index: {}]   ;;  %s2685_s3 = inlined_call_operand.vmem [shape: f32[3,1,64], index: 3, kind: input, shape index: {}]   ;;  %s2686_s4 = inlined_call_operand.vmem [shape: bf16[64,64], index: 4, kind: input, shape index: {}]   ;;  %s2687_s5 = inlined_call_operand.hbm [shape: f32[1,64], index: 5, kind: input, shape index: {}]   ;;  %s2688_s6 = inlined_call_operand.hbm [shape: f32[1,64], index: 6, kind: input, shape index: {}]   ;;  %s2689_s7 = inlined_call_operand.hbm [shape: f32[1,64], index: 7, kind: input, shape index: {}]   ;;  %s2690_s8 = inlined_call_operand.hbm [shape: bf16[64,128], index: 8, kind: input, shape index: {}]   ;;  %s2691_s9 = inlined_call_operand.hbm [shape: f32[1,128], index: 9, kind: input, shape index: {}]   ;;  %s2692_s10 = inlined_call_operand.vmem [shape: bf16[128,64], index: 10, kind: input, shape index: {}]   ;;  %s2693_s11 = inlined_call_operand.hbm [shape: f32[1,64], index: 11, kind: input, shape index: {}]   ;;  %s2694_s12 = inlined_call_operand.hbm [shape: f32[1,64], index: 12, kind: input, shape index: {}]   ;;  %s2695_s13 = inlined_call_operand.hbm [shape: f32[1,64], index: 13, kind: input, shape index: {}]   ;;  %s2696_s14 = inlined_call_operand.vmem [shape: bf16[64,32], index: 14, kind: input, shape index: {}]   ;;  %s2697_s15 = inlined_call_operand.hbm [shape: f32[1,32], index: 15, kind: input, shape index: {}]   ;;  %s2698_s16 = inlined_call_operand.vmem [shape: bf16[32,64], index: 16, kind: input, shape index: {}]   ;;  %s2699_s17 = inlined_call_operand.hbm [shape: bf16[32,64], index: 17, kind: input, shape index: {}]   ;;  %s2700_s18 = inlined_call_operand.hbm [shape: f32[1,64], index: 18, kind: input, shape index: {}]   ;;  %s2701_s19 = inlined_call_operand.vmem [shape: bf16[64,32], index: 19, kind: input, shape index: {}]   ;;  %s2702_s20 = inlined_call_operand.hbm [shape: f32[1,32], index: 20, kind: input, shape index: {}]   ;;  %s2703_s21 = inlined_call_operand.hbm [shape: bf16[32,128], index: 21, kind: input, shape index: {}]   ;;  %s2704_s22 = inlined_call_operand.vmem [shape: f32[1,128], index: 22, kind: input, shape index: {}]   ;;  %s2705_s23 = inlined_call_operand.vmem [shape: f32[2,1,128], index: 23, kind: output, shape index: {}]  }
   0x1   :  { %2711 = sst [smem:[#allocation29_spill]] %s2682_s0 }
   0x2   :  { %2712 = sst [smem:[#allocation30_spill]] %s2683_s1 }
   0x3   :  { %2713 = sst [smem:[#allocation31_spill]] %s2684_s2 }
   0x4   :  { %2714 = sst [smem:[#allocation32_spill]] %s2685_s3 }
   0x5   :  { %2715 = sst [smem:[#allocation33_spill]] %s2686_s4 }
   0x6   :  { %2716 = sst [smem:[#allocation34_spill]] %s2687_s5 }
   0x7   :  { %2717 = sst [smem:[#allocation35_spill]] %s2688_s6 }
   0x8   :  { %2718 = sst [smem:[#allocation36_spill]] %s2689_s7 }
   0x9   :  { %28 = vsyncpa [#allocation3], 0 }
   0xa   :  { %29 = vsyncpa [#allocation5], 0 }
   0xb   :  { %30 = vsyncpa [#allocation8], 0 }
   0xc   :  { %31 = vsyncpa [#allocation11], 0 }
   0xd   :  { %32 = vsyncpa [#allocation14], 0 }
   0xe   :  { %33 = vsyncpa [#allocation17], 0  ;;  %s2719_s24 = sld [smem:[#allocation35_spill]] }
  0x14   :  { %s61_s25 = sshll.u32 %s2719_s24, 4  ;;  %s62_s25 = int_to_ptr.hbm [resolvable:$true] %s61_s25 }
  0x15   :  { %34 = vsyncpa [#allocation20], 0  ;;  %s2211_s5 = smov [#allocation4]   ;;  %s82_s6 = sshll.u32 %s2690_s8, 4  ;;  %s83_s6 = int_to_ptr.hbm [resolvable:$true] %s82_s6 }
  0x16   :  { %s63_s1 = sshll.u32 %s2211_s5, 4  ;;  %s2212_s27 = smov [#allocation7]   ;;  %s64_s1 = int_to_ptr.vmem [resolvable:$true] %s63_s1 }
  0x17   :  { %66 = dma.hbm_to_vmem [thread:$0]  %s62_s25, 16, %s64_s1, [#allocation5]  }
  0x18   :  { %s84_s7 = sshll.u32 %s2212_s27, 4  ;;  %s2213_s28 = smov 64   ;;  %s85_s7 = int_to_ptr.vmem [resolvable:$true] %s84_s7 }
  0x19   :  { %s2214_s29 = smov 4   ;;  %s109_s4 = sshll.u32 %s2693_s11, 4  ;;  %s110_s4 = int_to_ptr.hbm [resolvable:$true] %s109_s4 }
  0x1a   :  { %90 = dma.hbm_to_vmem [thread:$0]  %s83_s6, 512, %s85_s7, [#allocation8], %s2213_s28, %s2213_s28, %s2214_s29  }
  0x1b   :  { %s2215_s30 = smov [#allocation10]   ;;  %s131_s5 = sshll.u32 %s2695_s13, 4  ;;  %s132_s5 = int_to_ptr.hbm [resolvable:$true] %s131_s5 }
  0x1c   :  { %s111_s24 = sshll.u32 %s2215_s30, 4  ;;  %s2216_s1 = smov [#allocation13]   ;;  %s112_s24 = int_to_ptr.vmem [resolvable:$true] %s111_s24 }
  0x1d   :  { %114 = dma.hbm_to_vmem [thread:$0]  %s110_s4, 16, %s112_s24, [#allocation11]  }
  0x1e   :  { %s133_s26 = sshll.u32 %s2216_s1, 4  ;;  %s156_s6 = sshll.u32 %s2699_s17, 4  ;;  %s134_s26 = int_to_ptr.vmem [resolvable:$true] %s133_s26  ;;  %s157_s6 = int_to_ptr.hbm [resolvable:$true] %s156_s6 }
  0x1f   :  { %136 = dma.hbm_to_vmem [thread:$0]  %s132_s5, 16, %s134_s26, [#allocation14]  }
  0x20   :  { %s183_s3 = sshll.u32 %s2702_s20, 4  ;;  %s2217_s0 = smov [#allocation16]   ;;  %s184_s3 = int_to_ptr.hbm [resolvable:$true] %s183_s3 }
  0x21   :  { %s158_s30 = sshll.u32 %s2217_s0, 4  ;;  %s2218_s13 = smov [#allocation19]   ;;  %s159_s30 = int_to_ptr.vmem [resolvable:$true] %s158_s30 }
  0x22   :  { %164 = dma.hbm_to_vmem [thread:$0]  %s157_s6, 256, %s159_s30, [#allocation17], %s2213_s28, %s2213_s28, %s2214_s29  }
  0x23   :  { %s185_s4 = sshll.u32 %s2218_s13, 4  ;;  %s2720_s17 = sld [smem:[#allocation34_spill]]  ;;  %s186_s4 = int_to_ptr.vmem [resolvable:$true] %s185_s4 }
  0x24   :  { %188 = dma.hbm_to_vmem [thread:$0]  %s184_s3, 16, %s186_s4, [#allocation20]  }
  0x25   :  { %s2721_s20 = sld [smem:[#allocation36_spill]]  ;;  %s2219_s2 = smov [#allocation2]  }
  0x26   :  { %s52_s27 = sshll.u32 %s2219_s2, 4  ;;  %s2220_s11 = smov [#allocation6]   ;;  %s53_s27 = int_to_ptr.vmem [resolvable:$true] %s52_s27 }
  0x27   :  { %s74_s6 = sshll.u32 %s2220_s11, 4  ;;  %s96_s30 = sshll.u32 %s2691_s9, 4  ;;  %s75_s6 = int_to_ptr.vmem [resolvable:$true] %s74_s6  ;;  %s97_s30 = int_to_ptr.hbm [resolvable:$true] %s96_s30 }
  0x28   :  { %s120_s4 = sshll.u32 %s2694_s12, 4  ;;  %s2221_s24 = smov [#allocation9]   ;;  %s121_s4 = int_to_ptr.hbm [resolvable:$true] %s120_s4 }
  0x29   :  { %s50_s25 = sshll.u32 %s2720_s17, 4  ;;  %s98_s8 = sshll.u32 %s2221_s24, 4  ;;  %s51_s25 = int_to_ptr.hbm [resolvable:$true] %s50_s25  ;;  %s99_s8 = int_to_ptr.vmem [resolvable:$true] %s98_s8 }
  0x2a   :  { %55 = dma.hbm_to_vmem [thread:$0]  %s51_s25, 16, %s53_s27, [#allocation3]  }
  0x2b   :  { %s72_s26 = sshll.u32 %s2721_s20, 4  ;;  %s2222_s17 = smov [#allocation12]   ;;  %s73_s26 = int_to_ptr.hbm [resolvable:$true] %s72_s26 }
  0x2c   :  { %77 = dma.hbm_to_vmem [thread:$0]  %s73_s26, 16, %s75_s6, [#allocation5]  }
  0x2d   :  { %101 = dma.hbm_to_vmem [thread:$0]  %s97_s30, 16, %s99_s8, [#allocation8]  }
  0x2e   :  { %s122_s25 = sshll.u32 %s2222_s17, 4  ;;  %s144_s20 = sshll.u32 %s2697_s15, 4  ;;  %s123_s25 = int_to_ptr.vmem [resolvable:$true] %s122_s25  ;;  %s145_s20 = int_to_ptr.hbm [resolvable:$true] %s144_s20 }
  0x2f   :  { %125 = dma.hbm_to_vmem [thread:$0]  %s121_s4, 16, %s123_s25, [#allocation11]  }
  0x30   :  { %s170_s2 = sshll.u32 %s2700_s18, 4  ;;  %s2223_s27 = smov [#allocation15]   ;;  %s171_s2 = int_to_ptr.hbm [resolvable:$true] %s170_s2 }
  0x31   :  { %s146_s12 = sshll.u32 %s2223_s27, 4  ;;  %s2224_s11 = smov [#allocation18]   ;;  %s147_s12 = int_to_ptr.vmem [resolvable:$true] %s146_s12 }
  0x32   :  { %149 = dma.hbm_to_vmem [thread:$0]  %s145_s20, 16, %s147_s12, [#allocation14]  }
  0x33   :  { %s172_s6 = sshll.u32 %s2224_s11, 4  ;;  %s193_s30 = sshll.u32 %s2703_s21, 4  ;;  %s173_s6 = int_to_ptr.vmem [resolvable:$true] %s172_s6  ;;  %s194_s30 = int_to_ptr.hbm [resolvable:$true] %s193_s30 }
  0x34   :  { %175 = dma.hbm_to_vmem [thread:$0]  %s171_s2, 16, %s173_s6, [#allocation17]  }
  0x35   :  { %s2225_s15 = smov [#allocation21]  }
  0x36   :  { %s195_s13 = sshll.u32 %s2225_s15, 4  ;;  %s196_s13 = int_to_ptr.vmem [resolvable:$true] %s195_s13 }
  0x37   :  { %201 = dma.hbm_to_vmem [thread:$0]  %s194_s30, 256, %s196_s13, [#allocation20], %s2213_s28, %s2213_s28, %s2214_s29  }
  0x38   :  { %2197 = dma.done.wait [#allocation3], 16  }
  0x39   :  { %2198 = vsyncadd [#allocation3], 4294967280 }
  0x3a   :  { %2199 = dma.done.wait [#allocation5], 32  }
  0x3b   :  { %2200 = vsyncadd [#allocation5], 4294967264 }
  0x3c   :  { %2201 = dma.done.wait [#allocation8], 528  }
  0x3d   :  { %2202 = vsyncadd [#allocation8], 4294966768 }
  0x3e   :  { %2203 = dma.done.wait [#allocation11], 32  }
  0x3f   :  { %2204 = vsyncadd [#allocation11], 4294967264 }
  0x40   :  { %2205 = dma.done.wait [#allocation14], 32  }
  0x41   :  { %2206 = vsyncadd [#allocation14], 4294967264 }
  0x42   :  { %2207 = dma.done.wait [#allocation17], 272  }
  0x43   :  { %2208 = vsyncadd [#allocation17], 4294967024 }
  0x44   :  { %2209 = dma.done.wait [#allocation20], 272  }
  0x45   :  { %2210 = vsyncadd [#allocation20], 4294967024  ;;  %s2722_s3 = sld [smem:[#allocation31_spill]]  ;;  %vm296_vm0 = vcmask 523264   ;;  %vm432_vm1 = vcmask 130048   ;;  %s2226_s1 = smov 112  }
  0x46   :  { %s2723_s6 = sld [smem:[#allocation29_spill]]  ;;  %vm471_vm2 = vcmask 64512   ;;  %vm499_vm3 = vcmask 1043456   ;;  %s2227_s9 = smov 96   ;;  %vm1320_vm13 = vcmask 1041409   ;;  %vm1384_vm14 = vcmask 261120  }
  0x47   :  { %s2724_s13 = sld [smem:[#allocation32_spill]]  ;;  %s2228_s26 = smov 80  }
  0x48   :  { %s2725_s12 = sld [smem:[#allocation33_spill]] }
  0x49   :  { %s2726_s21 = sld [smem:[#allocation30_spill]] }
  0x4b   :  { %v1767_v0 = vld [vmem:[%s2722_s3 + $0x18] sm:$0xff]  ;;  %v1766_v2 = vld [vmem:[%s2722_s3 + $0x10] sm:$0xff]  ;;  %v1765_v4 = vld [vmem:[%s2722_s3 + $0x8] sm:$0xff] }
  0x4c   :  { %v1771_v1 = vld [vmem:[%s2722_s3 + $0x38] sm:$0xff]  ;;  %304 = vmatpush.bf16.msra.mxu0 %v1767_v0  ;;  %v1770_v3 = vld [vmem:[%s2722_s3 + $0x30] sm:$0xff]  ;;  %v1769_v5 = vld [vmem:[%s2722_s3 + $0x28] sm:$0xff] }
  0x4d   :  { %356 = vmatpush.bf16.msra.mxu1 %v1771_v1  ;;  %v1764_v6 = vld [vmem:[%s2722_s3] sm:$0xff]  ;;  %v2430_v9 = vld [vmem:[%s2723_s6 + $0x8] sm:$0xff]  ;;  %v1775_v13 = vld [vmem:[%s2722_s3 + $0x58] sm:$0xff] }
  0x4e   :  { %v1768_v7 = vld [vmem:[%s2722_s3 + $0x20] sm:$0xff]  ;;  %408 = vmatpush.bf16.msra.mxu2 %v1775_v13  ;;  %v1774_v14 = vld [vmem:[%s2722_s3 + $0x50] sm:$0xff]  ;;  %v1773_v20 = vld [vmem:[%s2722_s3 + $0x48] sm:$0xff] }
  0x4f   :  { %v2425_v8 = vld [vmem:[%s2723_s6] sm:$0xff] }
  0x50   :  { %305 = vmatpush.bf16.msra.mxu0 %v1766_v2  ;;  %v259_v10 = vpack.c.bf16 %v2430_v9, %v2425_v8  ;;  %v1825_v11 = vld [vmem:[%s2724_s13] ss:$0 sm:$0xff]  ;;  %v1826_v12 = vld [vmem:[%s2724_s13 + $0x1] ss:$0 sm:$0xff]  ;;  %v1827_v45 = vld [vmem:[%s2724_s13 + $0x2] ss:$0 sm:$0xff] }
  0x51   :  { %357 = vmatpush.bf16.msra.mxu1 %v1770_v3  ;;  %v1772_v25 = vld [vmem:[%s2722_s3 + $0x40] sm:$0xff] }
  0x52   :  { %409 = vmatpush.bf16.msra.mxu2 %v1774_v14 }
  0x54   :  { %306 = vmatpush.bf16.msra.mxu0 %v1765_v4 }
  0x55   :  { %358 = vmatpush.bf16.msra.mxu1 %v1769_v5 }
  0x56   :  { %410 = vmatpush.bf16.msra.mxu2 %v1773_v20 }
  0x58   :  { %307 = vmatpush.bf16.msra.mxu0 %v1764_v6 }
  0x59   :  { %359 = vmatpush.bf16.msra.mxu1 %v1768_v7 }
  0x5a   :  { %411 = vmatpush.bf16.msra.mxu2 %v1772_v25 }
  0x5b   :  { %1565 = vmatmul.msk.bf16.vlgmr.msra.gmra.mxu0 %vm296_vm0, %v259_v10 }
  0x5c   :  { %1591 = vmatmul.msk.bf16.vlgmr.msra.gmra.mxu1 %vm296_vm0, %v259_v10 }
  0x5d   :  { %1617 = vmatmul.msk.bf16.vlgmr.msra.gmra.mxu2 %vm296_vm0, %v259_v10 }
  0xd8   :  { %v309_v15 = vpop.f32.mrf.mxu0 }
  0xd9   :  { %v361_v16 = vpop.f32.mrf.mxu1  ;;  %v310_v17 = vadd.f32 %v1825_v11, %v309_v15 }
  0xda   :  { %v362_v18 = vadd.f32 %v1826_v12, %v361_v16 }
  0xdb   :  { %v418_v21 = vpack.c.bf16 %v310_v17, %v310_v17 }
  0xdc   :  { %v420_v19 = vpack.c.bf16 %v362_v18, %v362_v18 }
  0xdd   :  { %v538_v28 = vunpack.c.l.b16 %v418_v21 }
  0xde   :  { %v543_v22 = vunpack.c.l.b16 %v420_v19  ;;  %v437_v23 = vsel %vm432_vm1, %v420_v19, 0 }
  0xdf   :  { %446 = vmatpush.bf16.xpose.msra.mxu3 %v437_v23  ;;  %v2459_v32 = vpack.c.b16 %v538_v28, %v538_v28 }
  0xe0   :  { %v2452_v24 = vpack.c.b16 %v543_v22, %v543_v22  ;;  %v311_v26 = vpop.f32.mrf.mxu0  ;;  %v413_v48 = vpop.f32.mrf.mxu2 }
  0xe1   :  { %v363_v27 = vpop.f32.mrf.mxu1  ;;  %v312_v30 = vadd.f32 %v1825_v11, %v311_v26  ;;  %v414_v49 = vadd.f32 %v1827_v45, %v413_v48 }
  0xe2   :  { %v364_v29 = vadd.f32 %v1826_v12, %v363_v27  ;;  %545 = vrot.lane.b32.xlu0 %v2452_v24, %s2226_s1 }
  0xe3   :  { %v419_v35 = vpack.c.bf16 %v312_v30, %v312_v30  ;;  %v422_v50 = vpack.c.bf16 %v414_v49, %v414_v49 }
  0xe4   :  { %v421_v31 = vpack.c.bf16 %v364_v29, %v364_v29 }
  0xe5   :  { %v567_v37 = vunpack.c.l.b16 %v419_v35  ;;  %v501_v51 = vsel %vm499_vm3, %v422_v50, 0  ;;  %v620_v6 = vunpack.c.l.b16 %v422_v50  ;;  %v1777_v50 = vld [vmem:[%s2725_s12 + $0x8] sm:$0xff] }
  0xe6   :  { %v572_v33 = vunpack.c.l.b16 %v421_v31  ;;  %1618 = vmatmul.msk.bf16.vlgmr.msra.gmra.mxu3 %vm432_vm1, %v418_v21  ;;  %v456_v34 = vsel %vm432_vm1, %v421_v31, 0  ;;  %510 = vmatpush.bf16.msrb.mxu0 %v501_v51 }
  0xe7   :  { %465 = vmatpush.bf16.xpose.msrb.mxu3 %v456_v34  ;;  %v2470_v38 = vpack.c.b16 %v567_v37, %v567_v37  ;;  %v2491_v7 = vpack.c.b16 %v620_v6, %v620_v6 }
  0xe8   :  { %v2464_v36 = vpack.c.b16 %v572_v33, %v572_v33  ;;  %v415_v53 = vpop.f32.mrf.mxu2 }
  0xe9   :  { %v416_v54 = vadd.f32 %v1827_v45, %v415_v53 }
  0xea   :  { %574 = vrot.lane.b32.xlu1 %v2464_v36, %s2226_s1  ;;  %540 = vrot.lane.b32.xlu0 %v2459_v32, %s2226_s1 }
  0xeb   :  { %v2484_v55 = vpack.c.bf16 %v416_v54, %v416_v54 }
  0xed   :  { %v520_v56 = vsel %vm499_vm3, %v2484_v55, 0 }
  0xee   :  { %529 = vmatpush.bf16.msrb.mxu1 %v520_v56 }
  0xf2   :  { %569 = vrot.lane.b32.xlu1 %v2470_v38, %s2226_s1 }
  0xf6   :  { %1619 = vmatmul.msk.bf16.vlgmr.msrb.gmra.mxu3 %vm432_vm1, %v419_v35 }
 0x154   :  { %v546_v39 = vpop.permute.xlu0 %545 }
 0x155   :  { %v551_v40 = vsel %vm432_vm1, %v546_v39, 0  ;;  %v644_v39 = vunpack.c.l.b16 %v2484_v55 }
 0x156   :  { %560 = vmatpush.bf16.xpose.msrb.mxu2 %v551_v40 }
 0x157   :  { %v2509_v40 = vpack.c.b16 %v644_v39, %v644_v39 }
 0x15c   :  { %v575_v41 = vpop.permute.xlu1 %574  ;;  %v541_v42 = vpop.permute.xlu0 %540 }
 0x15d   :  { %v580_v43 = vsel %vm432_vm1, %v575_v41, 0  ;;  %1622 = vmatmul.msk.bf16.vlgmr.msrb.gmra.mxu2 %vm432_vm1, %v541_v42 }
 0x15e   :  { %589 = vmatpush.bf16.xpose.msra.mxu3 %v580_v43  ;;  %690 = vmatpush.bf16.msra.mxu2 %v1777_v50 }
 0x164   :  { %v570_v44 = vpop.permute.xlu1 %569 }
 0x165   :  { %1623 = vmatmul.msk.bf16.vlgmr.msra.gmra.mxu3 %vm432_vm1, %v570_v44 }
 0x169   :  { %v448_v46 = vpop.f32.mrf.mxu3 }
 0x16a   :  { %v472_v47 = vsel %vm471_vm2, %v448_v46, -inf }
 0x16b   :  { %473 = vmax.xlane.f32.xlu2 %v472_v47 }
 0x171   :  { %v450_v52 = vpop.f32.mrf.mxu3 }
 0x179   :  { %v467_v57 = vpop.f32.mrf.mxu3 }
 0x17a   :  { %v475_v10 = vsel %vm471_vm2, %v467_v57, -inf }
 0x181   :  { %v469_v58 = vpop.f32.mrf.mxu3 }
 0x1de   :  { %v474_v59 = vpop.xlane.xlu2 %473 }
 0x1df   :  { %v478_v60 = vsub.f32 %v448_v46, %v474_v59 }
 0x1e0   :  { %v562_v61 = vpop.f32.mrf.mxu2 }
 0x1e1   :  { %v480_v62 = vmul.f32 1.442695, %v478_v60  ;;  %v595_v63 = vsel %vm471_vm2, %v562_v61, -inf }
 0x1e2   :  { %596 = vmax.xlane.f32.xlu2 %v595_v63 }
 0x1e3   :  { %1839 = vpow2.f32 %v480_v62 }
 0x1e8   :  { %v564_v0 = vpop.f32.mrf.mxu2  ;;  %v591_v1 = vpop.f32.mrf.mxu3 }
 0x1e9   :  { %v1840_v2 = vpop.eup %1839  ;;  %v598_v5 = vsel %vm471_vm2, %v591_v1, -inf }
 0x1ea   :  { %v484_v3 = vsel %vm471_vm2, %v1840_v2, 0.0 }
 0x1eb   :  { %485 = vadd.xlane.f32.xlu0 %v484_v3 }
 0x1f0   :  { %v593_v4 = vpop.f32.mrf.mxu3 }
 0x1f3   :  { %599 = vmax.xlane.f32.xlu0 %v598_v5 }
 0x1fa   :  { %622 = vrot.lane.b32.xlu2 %v2491_v7, %s2226_s1 }
 0x202   :  { %727 = vrot.lane.b32.xlu2 %v2452_v24, %s2227_s9 }
 0x20a   :  { %725 = vrot.lane.b32.xlu2 %v2459_v32, %s2227_s9 }
 0x233   :  { %476 = vmax.xlane.f32.xlu2 %v475_v10 }
 0x255   :  { %v597_v11 = vpop.xlane.xlu2 %596 }
 0x256   :  { %v601_v12 = vsub.f32 %v562_v61, %v597_v11 }
 0x258   :  { %v603_v13 = vmul.f32 1.442695, %v601_v12 }
 0x25a   :  { %1841 = vpow2.f32 %v603_v13 }
 0x25d   :  { %v623_v14 = vpop.permute.xlu2 %622 }
 0x25e   :  { %v628_v15 = vsel %vm499_vm3, %v623_v14, 0  ;;  %v486_v16 = vpop.xlane.xlu0 %485 }
 0x25f   :  { %1843 = vrcp.f32 %v486_v16  ;;  %637 = vmatpush.bf16.msra.mxu0 %v628_v15 }
 0x260   :  { %v1842_v17 = vpop.eup %1841 }
 0x261   :  { %v607_v18 = vsel %vm471_vm2, %v1842_v17, 0.0 }
 0x262   :  { %608 = vadd.xlane.f32.xlu1 %v607_v18 }
 0x265   :  { %v1844_v19 = vpop.eup %1843  ;;  %v728_v22 = vpop.permute.xlu2 %727 }
 0x266   :  { %v492_v20 = vmul.f32 %v1844_v19, %v1840_v2  ;;  %v600_v21 = vpop.xlane.xlu0 %599  ;;  %v733_v27 = vsel %vm432_vm1, %v728_v22, 0 }
 0x267   :  { %v602_v23 = vsub.f32 %v591_v1, %v600_v21  ;;  %v1776_v1 = vld [vmem:[%s2725_s12] sm:$0xff] }
 0x268   :  { %v494_v25 = vpack.c.bf16 %v492_v20, %v492_v20  ;;  %718 = vmatpush.bf16.msrb.mxu3 %v1776_v1 }
 0x269   :  { %v605_v26 = vmul.f32 1.442695, %v602_v23 }
 0x26a   :  { %1620 = vmatmul.msk.bf16.vlgmr.msrb.gmra.mxu0 %vm471_vm2, %v494_v25 }
 0x26b   :  { %1845 = vpow2.f32 %v605_v26  ;;  %742 = vmatpush.bf16.xpose.msrb.mxu0 %v733_v27 }
 0x26d   :  { %v726_v30 = vpop.permute.xlu2 %725 }
 0x271   :  { %v1846_v28 = vpop.eup %1845 }
 0x272   :  { %v610_v29 = vsel %vm471_vm2, %v1846_v28, 0.0 }
 0x273   :  { %611 = vadd.xlane.f32.xlu0 %v610_v29 }
 0x287   :  { %750 = vrot.lane.b32.xlu0 %v2464_v36, %s2227_s9 }
 0x2a6   :  { %v477_v31 = vpop.xlane.xlu2 %476 }
 0x2a7   :  { %v479_v33 = vsub.f32 %v467_v57, %v477_v31 }
 0x2a9   :  { %v482_v34 = vmul.f32 1.442695, %v479_v33 }
 0x2ab   :  { %1847 = vpow2.f32 %v482_v34 }
 0x2b1   :  { %v1848_v35 = vpop.eup %1847 }
 0x2b2   :  { %v487_v37 = vsel %vm471_vm2, %v1848_v35, 0.0 }
 0x2b3   :  { %488 = vadd.xlane.f32.xlu1 %v487_v37 }
 0x2cc   :  { %646 = vrot.lane.b32.xlu1 %v2509_v40, %s2226_s1 }
 0x2d4   :  { %748 = vrot.lane.b32.xlu1 %v2470_v38, %s2227_s9 }
 0x2d5   :  { %v609_v41 = vpop.xlane.xlu1 %608 }
 0x2d6   :  { %1849 = vrcp.f32 %v609_v41 }
 0x2dc   :  { %v1850_v42 = vpop.eup %1849  ;;  %795 = vrot.lane.b32.xlu1 %v2491_v7, %s2227_s9 }
 0x2dd   :  { %v615_v43 = vmul.f32 %v1850_v42, %v1842_v17 }
 0x2df   :  { %v617_v44 = vpack.c.bf16 %v615_v43, %v615_v43 }
 0x2e1   :  { %1624 = vmatmul.msk.bf16.vlgmr.msra.gmra.mxu0 %vm471_vm2, %v617_v44 }
 0x2e4   :  { %894 = vrot.lane.b32.xlu1 %v2464_v36, %s2228_s26 }
 0x2e6   :  { %v612_v36 = vpop.xlane.xlu0 %611 }
 0x2e7   :  { %v512_v45 = vpop.f32.mrf.mxu0 }
 0x2e8   :  { %v535_v2 = vpack.c.bf16 %v512_v45, %v512_v45 }
 0x2ea   :  { %v699_v5 = vunpack.c.l.b16 %v535_v2 }
 0x2ec   :  { %869 = vrot.lane.b32.xlu1 %v2459_v32, %s2228_s26 }
 0x2ef   :  { %v514_v46 = vpop.f32.mrf.mxu0 }
 0x2f1   :  { %1636 = vmatmul.msk.bf16.vlgmr.msrb.gmra.mxu0 %vm432_vm1, %v726_v30 }
 0x2f4   :  { %892 = vrot.lane.b32.xlu1 %v2470_v38, %s2228_s26 }
 0x2f9   :  { %v751_v53 = vpop.permute.xlu0 %750 }
 0x2fa   :  { %v756_v55 = vsel %vm432_vm1, %v751_v53, 0 }
 0x326   :  { %v489_v47 = vpop.xlane.xlu1 %488 }
 0x327   :  { %1851 = vrcp.f32 %v489_v47 }
 0x328   :  { %1853 = vrcp.f32 %v612_v36 }
 0x32d   :  { %v1852_v48 = vpop.eup %1851 }
 0x32e   :  { %v493_v49 = vmul.f32 %v1852_v48, %v1848_v35  ;;  %v1854_v32 = vpop.eup %1853 }
 0x32f   :  { %v616_v52 = vmul.f32 %v1854_v32, %v1846_v28 }
 0x330   :  { %v495_v51 = vpack.c.bf16 %v493_v49, %v493_v49 }
 0x331   :  { %v618_v56 = vpack.c.bf16 %v616_v52, %v616_v52 }
 0x332   :  { %1621 = vmatmul.msk.bf16.vlgmr.msrb.gmra.mxu1 %vm471_vm2, %v495_v51 }
 0x33e   :  { %v647_v54 = vpop.permute.xlu1 %646 }
 0x33f   :  { %v652_v38 = vsel %vm499_vm3, %v647_v54, 0 }
 0x340   :  { %661 = vmatpush.bf16.msra.mxu1 %v652_v38 }
 0x343   :  { %1625 = vmatmul.msk.bf16.vlgmr.msra.gmra.mxu1 %vm471_vm2, %v618_v56 }
 0x344   :  { %765 = vmatpush.bf16.xpose.msrb.mxu1 %v756_v55 }
 0x346   :  { %v749_v57 = vpop.permute.xlu1 %748 }
 0x34e   :  { %v796_v58 = vpop.permute.xlu1 %795 }
 0x34f   :  { %v801_v59 = vsel %vm499_vm3, %v796_v58, 0 }
 0x350   :  { %810 = vmatpush.bf16.msrb.mxu2 %v801_v59 }
 0x353   :  { %1637 = vmatmul.msk.bf16.vlgmr.msrb.gmra.mxu1 %vm432_vm1, %v749_v57 }
 0x356   :  { %v895_v17 = vpop.permute.xlu1 %894 }
 0x357   :  { %v900_v19 = vsel %vm432_vm1, %v895_v17, 0 }
 0x35e   :  { %v639_v60 = vpop.f32.mrf.mxu0  ;;  %v870_v45 = vpop.permute.xlu1 %869 }
 0x35f   :  { %v667_v12 = vpack.c.bf16 %v639_v60, %v639_v60 }
 0x361   :  { %v671_v15 = vunpack.c.l.b16 %v667_v12 }
 0x366   :  { %v641_v61 = vpop.f32.mrf.mxu0 }
 0x36e   :  { %v744_v62 = vpop.f32.mrf.mxu0 }
 0x36f   :  { %v771_v63 = vsel %vm471_vm2, %v744_v62, -inf }
 0x370   :  { %772 = vmax.xlane.f32.xlu0 %v771_v63 }
 0x376   :  { %v746_v0 = vpop.f32.mrf.mxu0 }
 0x384   :  { %816 = vrot.lane.b32.xlu0 %v2509_v40, %s2227_s9 }
 0x3af   :  { %v531_v3 = vpop.f32.mrf.mxu1 }
 0x3b0   :  { %v536_v4 = vpack.c.bf16 %v531_v3, %v531_v3 }
 0x3b2   :  { %v700_v6 = vunpack.c.l.b16 %v536_v4 }
 0x3b4   :  { %v701_v10 = vpack.c.b16 %v700_v6, %v699_v5 }
 0x3b6   :  { %1635 = vmatmul.msk.bf16.vlgmr.msrb.gmra.mxu3 %vm432_vm1, %v701_v10  ;;  %v1778_v10 = vld [vmem:[%s2725_s12 + $0x10] sm:$0xff] }
 0x3b7   :  { %v533_v11 = vpop.f32.mrf.mxu1  ;;  %860 = vmatpush.bf16.msra.mxu0 %v1778_v10  ;;  %v1783_v10 = vld [vmem:[#allocation7 + $0x18] sm:$0xff] }
 0x3c0   :  { %v663_v13 = vpop.f32.mrf.mxu1 }
 0x3c1   :  { %v668_v14 = vpack.c.bf16 %v663_v13, %v663_v13 }
 0x3c3   :  { %v672_v16 = vunpack.c.l.b16 %v668_v14 }
 0x3c5   :  { %v673_v18 = vpack.c.b16 %v672_v16, %v671_v15 }
 0x3c7   :  { %1630 = vmatmul.msk.bf16.vlgmr.msra.gmra.mxu2 %vm432_vm1, %v673_v18 }
 0x3c8   :  { %909 = vmatpush.bf16.xpose.msra.mxu2 %v900_v19  ;;  %v665_v20 = vpop.f32.mrf.mxu1 }
 0x3d0   :  { %v767_v21 = vpop.f32.mrf.mxu1 }
 0x3d1   :  { %v774_v31 = vsel %vm471_vm2, %v767_v21, -inf }
 0x3d8   :  { %v769_v22 = vpop.f32.mrf.mxu1 }
 0x3e3   :  { %v773_v23 = vpop.xlane.xlu0 %772 }
 0x3e4   :  { %v777_v25 = vsub.f32 %v744_v62, %v773_v23 }
 0x3e6   :  { %v779_v26 = vmul.f32 1.442695, %v777_v25 }
 0x3e8   :  { %1855 = vpow2.f32 %v779_v26 }
 0x3ee   :  { %v1856_v27 = vpop.eup %1855 }
 0x3ef   :  { %v783_v28 = vsel %vm471_vm2, %v1856_v27, 0.0 }
 0x3f0   :  { %784 = vadd.xlane.f32.xlu2 %v783_v28 }
 0x3f6   :  { %v817_v29 = vpop.permute.xlu0 %816 }
 0x3f7   :  { %v822_v30 = vsel %vm499_vm3, %v817_v29, 0 }
 0x3f8   :  { %831 = vmatpush.bf16.msra.mxu3 %v822_v30 }
 0x408   :  { %871 = vrot.lane.b32.xlu2 %v2452_v24, %s2228_s26  ;;  %v893_v24 = vpop.permute.xlu1 %892 }
 0x431   :  { %775 = vmax.xlane.f32.xlu2 %v774_v31 }
 0x439   :  { %v720_v33 = vpop.f32.mrf.mxu3 }
 0x441   :  { %v722_v11 = vpop.f32.mrf.mxu3 }
 0x44a   :  { %v692_v34 = vpop.f32.mrf.mxu2 }
 0x44b   :  { %v2548_v35 = vadd.f32 %v720_v33, %v692_v34  ;;  %v1779_v33 = vld [vmem:[%s2725_s12 + $0x18] sm:$0xff] }
 0x452   :  { %v2555_v51 = vpop.f32.mrf.mxu2 }
 0x463   :  { %v785_v37 = vpop.xlane.xlu2 %784 }
 0x464   :  { %1857 = vrcp.f32 %v785_v37 }
 0x46a   :  { %v1858_v39 = vpop.eup %1857 }
 0x46b   :  { %v791_v41 = vmul.f32 %v1858_v39, %v1856_v27  ;;  %v872_v42 = vpop.permute.xlu2 %871 }
 0x46c   :  { %v877_v43 = vsel %vm432_vm1, %v872_v42, 0 }
 0x46d   :  { %v793_v44 = vpack.c.bf16 %v791_v41, %v791_v41  ;;  %886 = vmatpush.bf16.xpose.msra.mxu1 %v877_v43 }
 0x46f   :  { %1638 = vmatmul.msk.bf16.vlgmr.msrb.gmra.mxu2 %vm471_vm2, %v793_v44 }
 0x470   :  { %1128 = vmatpush.bf16.msrb.mxu2 %v1783_v10 }
 0x474   :  { %1645 = vmatmul.msk.bf16.vlgmr.msra.gmra.mxu1 %vm432_vm1, %v870_v45 }
 0x475   :  { %1004 = vmatpush.bf16.msrb.mxu1 %v1779_v33 }
 0x47f   :  { %1646 = vmatmul.msk.bf16.vlgmr.msra.gmra.mxu2 %vm432_vm1, %v893_v24 }
 0x4a4   :  { %v776_v46 = vpop.xlane.xlu2 %775 }
 0x4a5   :  { %v778_v47 = vsub.f32 %v767_v21, %v776_v46 }
 0x4a7   :  { %v781_v48 = vmul.f32 1.442695, %v778_v47  ;;  %v1828_v47 = vld [vmem:[#allocation2] ss:$0 sm:$0xff] }
 0x4a9   :  { %1859 = vpow2.f32 %v781_v48 }
 0x4af   :  { %v1860_v49 = vpop.eup %1859 }
 0x4b0   :  { %v786_v50 = vsel %vm471_vm2, %v1860_v49, 0.0 }
 0x4b1   :  { %787 = vadd.xlane.f32.xlu1 %v786_v50  ;;  %v723_v50 = vadd.f32 %v722_v11, %v2555_v51  ;;  %v1782_v11 = vld [vmem:[#allocation7 + $0x10] sm:$0xff] }
 0x4b2   :  { %1129 = vmatpush.bf16.msrb.mxu2 %v1782_v11 }
 0x4f1   :  { %v888_v36 = vpop.f32.mrf.mxu1 }
 0x4f2   :  { %v812_v32 = vpop.f32.mrf.mxu2  ;;  %v915_v52 = vsel %vm471_vm2, %v888_v36, -inf }
 0x4f3   :  { %916 = vmax.xlane.f32.xlu0 %v915_v52  ;;  %v837_v12 = vpack.c.bf16 %v812_v32, %v812_v32 }
 0x4f5   :  { %v841_v15 = vunpack.c.l.b16 %v837_v12  ;;  %v1781_v12 = vld [vmem:[#allocation7 + $0x8] sm:$0xff] }
 0x4f6   :  { %1130 = vmatpush.bf16.msrb.mxu2 %v1781_v12 }
 0x4f9   :  { %v890_v53 = vpop.f32.mrf.mxu1 }
 0x4fa   :  { %v814_v54 = vpop.f32.mrf.mxu2 }
 0x502   :  { %v911_v38 = vpop.f32.mrf.mxu2 }
 0x503   :  { %v918_v55 = vsel %vm471_vm2, %v911_v38, -inf }
 0x504   :  { %919 = vmax.xlane.f32.xlu2 %v918_v55 }
 0x50a   :  { %v913_v56 = vpop.f32.mrf.mxu2 }
 0x524   :  { %v788_v57 = vpop.xlane.xlu1 %787 }
 0x525   :  { %1861 = vrcp.f32 %v788_v57  ;;  %v2229_v57 = vmov 64.0  }
 0x52b   :  { %v1862_v58 = vpop.eup %1861 }
 0x52c   :  { %v792_v59 = vmul.f32 %v1862_v58, %v1860_v49 }
 0x52e   :  { %v794_v60 = vpack.c.bf16 %v792_v59, %v792_v59 }
 0x530   :  { %1639 = vmatmul.msk.bf16.vlgmr.msra.gmra.mxu3 %vm471_vm2, %v794_v60 }
 0x566   :  { %v917_v61 = vpop.xlane.xlu0 %916 }
 0x567   :  { %v921_v62 = vsub.f32 %v888_v36, %v917_v61 }
 0x569   :  { %v923_v63 = vmul.f32 1.442695, %v921_v62 }
 0x56b   :  { %1863 = vpow2.f32 %v923_v63 }
 0x571   :  { %v1864_v0 = vpop.eup %1863 }
 0x572   :  { %v927_v1 = vsel %vm471_vm2, %v1864_v0, 0.0 }
 0x573   :  { %928 = vadd.xlane.f32.xlu1 %v927_v1 }
 0x577   :  { %v920_v2 = vpop.xlane.xlu2 %919 }
 0x578   :  { %v922_v3 = vsub.f32 %v911_v38, %v920_v2 }
 0x57a   :  { %v925_v4 = vmul.f32 1.442695, %v922_v3 }
 0x57c   :  { %1865 = vpow2.f32 %v925_v4 }
 0x582   :  { %v1866_v5 = vpop.eup %1865 }
 0x583   :  { %v930_v6 = vsel %vm471_vm2, %v1866_v5, 0.0 }
 0x584   :  { %931 = vadd.xlane.f32.xlu2 %v930_v6 }
 0x58c   :  { %939 = vrot.lane.b32.xlu1 %v2491_v7, %s2228_s26 }
 0x59c   :  { %960 = vrot.lane.b32.xlu2 %v2509_v40, %s2228_s26 }
 0x5b3   :  { %v833_v13 = vpop.f32.mrf.mxu3 }
 0x5b4   :  { %v838_v14 = vpack.c.bf16 %v833_v13, %v833_v13 }
 0x5b6   :  { %v842_v16 = vunpack.c.l.b16 %v838_v14 }
 0x5b8   :  { %v843_v17 = vpack.c.b16 %v842_v16, %v841_v15  ;;  %v1780_v16 = vld [vmem:[#allocation7] sm:$0xff] }
 0x5b9   :  { %1131 = vmatpush.bf16.msrb.mxu2 %v1780_v16 }
 0x5ba   :  { %1644 = vmatmul.msk.bf16.vlgmr.msra.gmra.mxu0 %vm432_vm1, %v843_v17 }
 0x5bb   :  { %v835_v18 = vpop.f32.mrf.mxu3 }
 0x5e6   :  { %v929_v19 = vpop.xlane.xlu1 %928 }
 0x5e7   :  { %1867 = vrcp.f32 %v929_v19 }
 0x5ed   :  { %v1868_v20 = vpop.eup %1867 }
 0x5ee   :  { %v935_v21 = vmul.f32 %v1868_v20, %v1864_v0 }
 0x5f0   :  { %v937_v28 = vpack.c.bf16 %v935_v21, %v935_v21 }
 0x5f7   :  { %v932_v7 = vpop.xlane.xlu2 %931 }
 0x5f8   :  { %1869 = vrcp.f32 %v932_v7 }
 0x5f9   :  { %1871 = vrcp.f32 %v2229_v57 }
 0x5fe   :  { %v1870_v22 = vpop.eup %1869  ;;  %v940_v23 = vpop.permute.xlu1 %939 }
 0x5ff   :  { %v936_v25 = vmul.f32 %v1870_v22, %v1866_v5  ;;  %v945_v40 = vsel %vm499_vm3, %v940_v23, 0  ;;  %v961_v26 = vpop.permute.xlu2 %960  ;;  %v1872_v58 = vpop.eup %1871 }
 0x600   :  { %v966_v27 = vsel %vm499_vm3, %v961_v26, 0  ;;  %954 = vmatpush.bf16.msrb.mxu3 %v945_v40  ;;  %v1028_v59 = vmul.f32 64.0, %v1872_v58  ;;  %vm1032_vm4 = vweird.f32 %v1872_v58 }
 0x601   :  { %v938_v29 = vpack.c.bf16 %v936_v25, %v936_v25  ;;  %975 = vmatpush.bf16.msrb.mxu0 %v966_v27 }
 0x602   :  { %v1029_v60 = vsub.f32 1.0, %v1028_v59 }
 0x603   :  { %1647 = vmatmul.msk.bf16.vlgmr.msrb.gmra.mxu3 %vm471_vm2, %v937_v28 }
 0x604   :  { %1648 = vmatmul.msk.bf16.vlgmr.msrb.gmra.mxu0 %vm471_vm2, %v938_v29  ;;  %v1030_v51 = vmul.f32 %v1872_v58, %v1029_v60 }
 0x606   :  { %v1031_v61 = vadd.f32 %v1872_v58, %v1030_v51 }
 0x637   :  { %v862_v30 = vpop.f32.mrf.mxu0 }
 0x638   :  { %v867_v31 = vadd.f32 %v862_v30, %v2548_v35 }
 0x63f   :  { %v864_v34 = vpop.f32.mrf.mxu0 }
 0x640   :  { %v868_v32 = vadd.f32 %v864_v34, %v723_v50  ;;  %v1786_v50 = vld [vmem:[%s2692_s10 + $0x10] sm:$0xff] }
 0x681   :  { %v977_v37 = vpop.f32.mrf.mxu0 }
 0x682   :  { %v982_v39 = vpack.c.bf16 %v977_v37, %v977_v37 }
 0x684   :  { %v986_v43 = vunpack.c.l.b16 %v982_v39  ;;  %v1830_v39 = vld [vmem:[#allocation6] ss:$0 sm:$0xff] }
 0x686   :  { %v956_v41 = vpop.f32.mrf.mxu3 }
 0x687   :  { %v981_v42 = vpack.c.bf16 %v956_v41, %v956_v41 }
 0x689   :  { %v985_v44 = vunpack.c.l.b16 %v981_v42  ;;  %v979_v45 = vpop.f32.mrf.mxu0 }
 0x68b   :  { %v987_v24 = vpack.c.b16 %v986_v43, %v985_v44 }
 0x68d   :  { %1653 = vmatmul.msk.bf16.vlgmr.msrb.gmra.mxu1 %vm432_vm1, %v987_v24 }
 0x68e   :  { %v958_v46 = vpop.f32.mrf.mxu3 }
 0x68f   :  { %v1791_v46 = vld [vmem:[%s2692_s10 + $0x38] sm:$0xff] }
 0x690   :  { %1225 = vmatpush.bf16.msra.mxu3 %v1791_v46  ;;  %v1797_v46 = vld [vmem:[%s2698_s16 + $0x8] sm:$0xff] }
 0x691   :  { %1429 = vmatpush.bf16.msra.mxu2 %v1797_v46 }
 0x70a   :  { %v1006_v48 = vpop.f32.mrf.mxu1 }
 0x70b   :  { %v1011_v35 = vadd.f32 %v1006_v48, %v867_v31  ;;  %v1829_v31 = vld [vmem:[#allocation4] ss:$0 sm:$0xff]  ;;  %v1789_v48 = vld [vmem:[%s2692_s10 + $0x28] sm:$0xff] }
 0x70d   :  { %v1017_v49 = vadd.f32 %v1828_v47, %v1011_v35  ;;  %v1788_v35 = vld [vmem:[%s2692_s10 + $0x20] sm:$0xff] }
 0x70f   :  { %v1019_v36 = vadd.f32 %v1017_v49, %v2425_v8  ;;  %v2584_v8 = vsel %vm1032_vm4, %v1872_v58, %v1031_v61  ;;  %v1787_v49 = vld [vmem:[%s2692_s10 + $0x18] sm:$0xff] }
 0x711   :  { %v1021_v52 = vsel %vm296_vm0, %v1019_v36, 0.0 }
 0x712   :  { %v1008_v53 = vpop.f32.mrf.mxu1  ;;  %1022 = vadd.xlane.f32.xlu0 %v1021_v52 }
 0x713   :  { %v1012_v54 = vadd.f32 %v1008_v53, %v868_v32  ;;  %v1831_v32 = vld [vmem:[#allocation9] ss:$0 sm:$0xff] }
 0x714   :  { %v1784_v53 = vld [vmem:[%s2692_s10] sm:$0xff] }
 0x715   :  { %v1018_v38 = vadd.f32 %v1828_v47, %v1012_v54  ;;  %v1790_v47 = vld [vmem:[%s2692_s10 + $0x30] sm:$0xff] }
 0x716   :  { %1226 = vmatpush.bf16.msra.mxu3 %v1790_v47  ;;  %v1799_v47 = vld [vmem:[#allocation16 + $0x8] sm:$0xff] }
 0x717   :  { %v1020_v55 = vadd.f32 %v1018_v38, %v2430_v9  ;;  %1394 = vmatpush.bf16.msra.mxu1 %v1799_v47 }
 0x719   :  { %v1024_v56 = vsel %vm296_vm0, %v1020_v55, 0.0 }
 0x71a   :  { %1025 = vadd.xlane.f32.xlu0 %v1024_v56  ;;  %1227 = vmatpush.bf16.msra.mxu3 %v1789_v48  ;;  %v1297_v48 = vld [vmem:[%s2726_s21] sm:$0x1] }
 0x71e   :  { %1228 = vmatpush.bf16.msra.mxu3 %v1788_v35  ;;  %v1298_v35 = vld [vmem:[%s2726_s21 + $0x1] sm:$0x1] }
 0x722   :  { %1229 = vmatpush.bf16.msra.mxu3 %v1787_v49 }
 0x726   :  { %1230 = vmatpush.bf16.msra.mxu3 %v1786_v50  ;;  %v1299_v50 = vpack.c.bf16 %v1297_v48, %v1297_v48  ;;  %v1838_v48 = vld [vmem:[%s2704_s22] ss:$0 sm:$0xff] }
 0x785   :  { %v1023_v62 = vpop.xlane.xlu0 %1022 }
 0x786   :  { %v1034_v63 = vmul.f32 %v2584_v8, %v1023_v62 }
 0x788   :  { %v1036_v0 = vsub.f32 %v1019_v36, %v1034_v63  ;;  %v1785_v36 = vld [vmem:[%s2692_s10 + $0x8] sm:$0xff] }
 0x789   :  { %1231 = vmatpush.bf16.msra.mxu3 %v1785_v36  ;;  %v1300_v36 = vpack.c.bf16 %v1298_v35, %v1298_v35 }
 0x78a   :  { %v1038_v1 = vmul.f32 %v1036_v0, %v1036_v0 }
 0x78c   :  { %v1040_v9 = vsel %vm296_vm0, %v1038_v1, 0.0 }
 0x78d   :  { %1041 = vadd.xlane.f32.xlu1 %v1040_v9  ;;  %v1026_v2 = vpop.xlane.xlu0 %1025  ;;  %1232 = vmatpush.bf16.msra.mxu3 %v1784_v53  ;;  %v1404_v53 = vunpack.c.l.b16 %v1300_v36 }
 0x78e   :  { %v1035_v3 = vmul.f32 %v2584_v8, %v1026_v2 }
 0x790   :  { %v1037_v4 = vsub.f32 %v1020_v55, %v1035_v3 }
 0x792   :  { %v1039_v5 = vmul.f32 %v1037_v4, %v1037_v4 }
 0x794   :  { %v1043_v6 = vsel %vm296_vm0, %v1039_v5, 0.0 }
 0x795   :  { %1044 = vadd.xlane.f32.xlu2 %v1043_v6 }
 0x800   :  { %v1042_v13 = vpop.xlane.xlu1 %1041 }
 0x801   :  { %v1046_v14 = vmul.f32 %v1042_v13, %v2584_v8  ;;  %v1832_v13 = vld [vmem:[#allocation10] ss:$0 sm:$0xff] }
 0x803   :  { %v1048_v15 = vadd.f32 1e-12, %v1046_v14 }
 0x805   :  { %1873 = vrsqrt.f32 %v1048_v15  ;;  %vm1056_vm6 = vweird.f32 %v1048_v15 }
 0x808   :  { %v1045_v17 = vpop.xlane.xlu2 %1044 }
 0x809   :  { %v1047_v18 = vmul.f32 %v1045_v17, %v2584_v8 }
 0x80b   :  { %v1874_v19 = vpop.eup %1873  ;;  %v1049_v7 = vadd.f32 1e-12, %v1047_v18 }
 0x80c   :  { %v1051_v20 = vmul.f32 %v1874_v19, %v1048_v15  ;;  %vm1057_vm5 = vweird.f32 %v1874_v19 }
 0x80d   :  { %1875 = vrsqrt.f32 %v1049_v7  ;;  %vm1058_vm7 = vmor %vm1056_vm6, %vm1057_vm5  ;;  %vm1066_vm9 = vweird.f32 %v1049_v7 }
 0x80e   :  { %v1052_v21 = vmul.f32 %v1874_v19, %v1051_v20 }
 0x810   :  { %v1053_v22 = vmul.f32 0.5, %v1052_v21 }
 0x812   :  { %v1054_v23 = vsub.f32 1.5, %v1053_v22 }
 0x813   :  { %v1876_v25 = vpop.eup %1875 }
 0x814   :  { %v1055_v40 = vmul.f32 %v1874_v19, %v1054_v23  ;;  %v1061_v26 = vmul.f32 %v1876_v25, %v1049_v7  ;;  %vm1067_vm8 = vweird.f32 %v1876_v25 }
 0x815   :  { %vm1068_vm10 = vmor %vm1066_vm9, %vm1067_vm8 }
 0x816   :  { %v1062_v27 = vmul.f32 %v1876_v25, %v1061_v26  ;;  %v1059_v28 = vsel %vm1058_vm7, %v1874_v19, %v1055_v40 }
 0x817   :  { %v1070_v33 = vmul.f32 %v1059_v28, %v1036_v0 }
 0x818   :  { %v1063_v29 = vmul.f32 0.5, %v1062_v27 }
 0x819   :  { %v1076_v41 = vmul.f32 %v1829_v31, %v1070_v33  ;;  %v1794_v33 = vld [vmem:[%s2696_s14 + $0x10] sm:$0xff] }
 0x81a   :  { %v1064_v30 = vsub.f32 1.5, %v1063_v29 }
 0x81b   :  { %v1082_v44 = vadd.f32 %v1830_v39, %v1076_v41  ;;  %v1792_v41 = vld [vmem:[%s2696_s14] sm:$0xff] }
 0x81c   :  { %v1065_v34 = vmul.f32 %v1876_v25, %v1064_v30  ;;  %v1795_v30 = vld [vmem:[%s2696_s14 + $0x18] sm:$0xff] }
 0x81d   :  { %1354 = vmatpush.bf16.msra.mxu0 %v1795_v30 }
 0x81e   :  { %v1069_v37 = vsel %vm1068_vm10, %v1876_v25, %v1065_v34 }
 0x81f   :  { %v1071_v42 = vmul.f32 %v1069_v37, %v1037_v4 }
 0x821   :  { %v1077_v43 = vmul.f32 %v1829_v31, %v1071_v42  ;;  %1355 = vmatpush.bf16.msra.mxu0 %v1794_v33 }
 0x823   :  { %v1083_v45 = vadd.f32 %v1830_v39, %v1077_v43  ;;  %v1793_v39 = vld [vmem:[%s2696_s14 + $0x8] sm:$0xff] }
 0x825   :  { %v1084_v24 = vpack.c.bf16 %v1083_v45, %v1082_v44  ;;  %1356 = vmatpush.bf16.msra.mxu0 %v1793_v39 }
 0x827   :  { %1670 = vmatmul.msk.bf16.vlgmr.msrb.gmra.mxu2 %vm296_vm0, %v1084_v24 }
 0x829   :  { %1357 = vmatpush.bf16.msra.mxu0 %v1792_v41  ;;  %v1805_v41 = vld [vmem:[#allocation21 + $0x8] sm:$0xff] }
 0x8aa   :  { %v1133_v52 = vpop.f32.mrf.mxu2 }
 0x8ab   :  { %v1134_v54 = vadd.f32 %v1831_v32, %v1133_v52  ;;  %v1403_v52 = vunpack.c.l.b16 %v1299_v50 }
 0x8ad   :  { %v1138_v38 = vmul.f32 %v1134_v54, %v1134_v54 }
 0x8af   :  { %v1140_v55 = vmul.f32 %v1138_v38, %v1134_v54  ;;  %v1405_v38 = vrot.slane %v1404_v53, 7 }
 0x8b1   :  { %v1142_v56 = vmul.f32 0.044715, %v1140_v55 }
 0x8b2   :  { %v1135_v57 = vpop.f32.mrf.mxu2 }
 0x8b3   :  { %v1144_v58 = vadd.f32 %v1142_v56, %v1134_v54  ;;  %v1136_v59 = vadd.f32 %v1831_v32, %v1135_v57 }
 0x8b5   :  { %v1146_v60 = vmul.f32 0.7978846, %v1144_v58  ;;  %v1139_v51 = vmul.f32 %v1136_v59, %v1136_v59  ;;  %v1406_v58 = vsel %vm1320_vm13, %v1405_v38, %v1403_v52 }
 0x8b7   :  { %v1141_v61 = vmul.f32 %v1139_v51, %v1136_v59  ;;  %1877 = vtanh.f32 %v1146_v60  ;;  %v1407_v60 = vpack.c.b16 %v1406_v58, %v1406_v58 }
 0x8b9   :  { %v1143_v62 = vmul.f32 0.044715, %v1141_v61 }
 0x8bb   :  { %v1145_v63 = vadd.f32 %v1143_v62, %v1136_v59  ;;  %v1834_v62 = vld [vmem:[#allocation13] ss:$0 sm:$0xff] }
 0x8bd   :  { %v1147_v0 = vmul.f32 0.7978846, %v1145_v63  ;;  %v1878_v1 = vpop.eup %1877 }
 0x8be   :  { %v1150_v9 = vadd.f32 1.0, %v1878_v1 }
 0x8bf   :  { %1879 = vtanh.f32 %v1147_v0 }
 0x8c0   :  { %v1152_v3 = vmul.f32 0.5, %v1150_v9 }
 0x8c2   :  { %v1154_v6 = vmul.f32 %v1152_v3, %v1134_v54 }
 0x8c5   :  { %v1880_v2 = vpop.eup %1879 }
 0x8c6   :  { %v1151_v4 = vadd.f32 1.0, %v1880_v2 }
 0x8c8   :  { %v1153_v5 = vmul.f32 0.5, %v1151_v4 }
 0x8ca   :  { %v1155_v10 = vmul.f32 %v1153_v5, %v1136_v59  ;;  %v1833_v59 = vld [vmem:[#allocation12] ss:$0 sm:$0xff] }
 0x8cc   :  { %v1156_v11 = vpack.c.bf16 %v1155_v10, %v1154_v6 }
 0x8ce   :  { %1233 = vmatmul.bf16.vlgmr.msra.gmra.mxu3 %v1156_v11 }
 0x951   :  { %v1234_v12 = vpop.f32.mrf.mxu3 }
 0x952   :  { %v1235_v17 = vadd.f32 %v1832_v13, %v1234_v12 }
 0x954   :  { %v1239_v19 = vadd.f32 %v1235_v17, %v1082_v44 }
 0x956   :  { %v1241_v7 = vsel %vm296_vm0, %v1239_v19, 0.0 }
 0x959   :  { %v1236_v14 = vpop.f32.mrf.mxu3 }
 0x95a   :  { %v1237_v15 = vadd.f32 %v1832_v13, %v1236_v14 }
 0x95c   :  { %v1240_v16 = vadd.f32 %v1237_v15, %v1083_v45 }
 0x95e   :  { %v1244_v18 = vsel %vm296_vm0, %v1240_v16, 0.0 }
 0x95f   :  { %1245 = vadd.xlane.f32.xlu0 %v1244_v18  ;;  %v1798_v18 = vld [vmem:[#allocation16] sm:$0xff] }
 0x960   :  { %1395 = vmatpush.bf16.msra.mxu1 %v1798_v18 }
 0x964   :  { %1526 = vmatpush.bf16.msrb.mxu1 %v1805_v41 }
 0x967   :  { %1242 = vadd.xlane.f32.xlu0 %v1241_v7  ;;  %v1802_v7 = vld [vmem:[%s2701_s19 + $0x10] sm:$0xff] }
 0x9d2   :  { %v1246_v20 = vpop.xlane.xlu0 %1245 }
 0x9d3   :  { %v1248_v21 = vmul.f32 %v1246_v20, %v2584_v8  ;;  %v1835_v20 = vld [vmem:[#allocation15] ss:$0 sm:$0xff] }
 0x9d5   :  { %v1250_v22 = vsub.f32 %v1240_v16, %v1248_v21 }
 0x9d7   :  { %v1252_v23 = vmul.f32 %v1250_v22, %v1250_v22 }
 0x9d9   :  { %v1256_v25 = vsel %vm296_vm0, %v1252_v23, 0.0 }
 0x9da   :  { %1257 = vadd.xlane.f32.xlu0 %v1256_v25  ;;  %v1243_v40 = vpop.xlane.xlu0 %1242 }
 0x9db   :  { %v1247_v26 = vmul.f32 %v1243_v40, %v2584_v8 }
 0x9dd   :  { %v2622_v27 = vsub.f32 %v1239_v19, %v1247_v26  ;;  %v1803_v19 = vld [vmem:[%s2701_s19 + $0x18] sm:$0xff]  ;;  %v1801_v26 = vld [vmem:[%s2701_s19 + $0x8] sm:$0xff] }
 0x9de   :  { %1486 = vmatpush.bf16.msrb.mxu0 %v1803_v19 }
 0x9df   :  { %v1251_v28 = vmul.f32 %v2622_v27, %v2622_v27 }
 0x9e1   :  { %v1253_v29 = vsel %vm296_vm0, %v1251_v28, 0.0  ;;  %v1800_v28 = vld [vmem:[%s2701_s19] sm:$0xff] }
 0x9e2   :  { %1254 = vadd.xlane.f32.xlu0 %v1253_v29  ;;  %1487 = vmatpush.bf16.msrb.mxu0 %v1802_v7  ;;  %v1836_v29 = vld [vmem:[#allocation18] ss:$0 sm:$0xff] }
 0x9e6   :  { %1488 = vmatpush.bf16.msrb.mxu0 %v1801_v26 }
 0x9ea   :  { %1489 = vmatpush.bf16.msrb.mxu0 %v1800_v28 }
 0xa4d   :  { %v1258_v31 = vpop.xlane.xlu0 %1257 }
 0xa4e   :  { %v1260_v34 = vmul.f32 %v1258_v31, %v2584_v8 }
 0xa50   :  { %v1262_v37 = vadd.f32 1e-12, %v1260_v34 }
 0xa52   :  { %1881 = vrsqrt.f32 %v1262_v37  ;;  %vm1279_vm12 = vweird.f32 %v1262_v37 }
 0xa55   :  { %v1255_v42 = vpop.xlane.xlu0 %1254 }
 0xa56   :  { %v1259_v43 = vmul.f32 %v1255_v42, %v2584_v8  ;;  %v1796_v8 = vld [vmem:[%s2698_s16] sm:$0xff] }
 0xa57   :  { %1430 = vmatpush.bf16.msra.mxu2 %v1796_v8  ;;  %v1804_v42 = vld [vmem:[#allocation21] sm:$0xff] }
 0xa58   :  { %v1882_v44 = vpop.eup %1881  ;;  %v1261_v45 = vadd.f32 1e-12, %v1259_v43  ;;  %1527 = vmatpush.bf16.msrb.mxu1 %v1804_v42  ;;  %v1837_v43 = vld [vmem:[#allocation19] ss:$0 sm:$0xff] }
 0xa59   :  { %v1274_v24 = vmul.f32 %v1882_v44, %v1262_v37  ;;  %vm1280_vm11 = vweird.f32 %v1882_v44 }
 0xa5a   :  { %1883 = vrsqrt.f32 %v1261_v45  ;;  %vm1281_vm15 = vmor %vm1279_vm12, %vm1280_vm11  ;;  %1737 = vmatmul.msk.bf16.vlgmr.msra.gmra.mxu2 %vm1384_vm14, %v1407_v60  ;;  %vm1269_vm2 = vweird.f32 %v1261_v45 }
 0xa5b   :  { %v1275_v49 = vmul.f32 %v1882_v44, %v1274_v24 }
 0xa5d   :  { %v1276_v32 = vmul.f32 0.5, %v1275_v49 }
 0xa5f   :  { %v1277_v54 = vsub.f32 1.5, %v1276_v32 }
 0xa60   :  { %v1884_v55 = vpop.eup %1883 }
 0xa61   :  { %v1278_v56 = vmul.f32 %v1882_v44, %v1277_v54  ;;  %v1264_v57 = vmul.f32 %v1884_v55, %v1261_v45  ;;  %vm1270_vm1 = vweird.f32 %v1884_v55 }
 0xa62   :  { %vm1271_vm3 = vmor %vm1269_vm2, %vm1270_vm1 }
 0xa63   :  { %v1282_v51 = vsel %vm1281_vm15, %v1882_v44, %v1278_v56  ;;  %v1265_v61 = vmul.f32 %v1884_v55, %v1264_v57 }
 0xa64   :  { %v1284_v63 = vmul.f32 %v1282_v51, %v1250_v22 }
 0xa65   :  { %v1266_v0 = vmul.f32 0.5, %v1265_v61 }
 0xa66   :  { %v1290_v1 = vmul.f32 %v1833_v59, %v1284_v63 }
 0xa67   :  { %v1267_v9 = vsub.f32 1.5, %v1266_v0 }
 0xa68   :  { %v1296_v2 = vadd.f32 %v1834_v62, %v1290_v1 }
 0xa69   :  { %v1268_v3 = vmul.f32 %v1884_v55, %v1267_v9 }
 0xa6a   :  { %v1302_v5 = vpack.c.bf16 %v1296_v2, %v1296_v2 }
 0xa6b   :  { %v1272_v4 = vsel %vm1271_vm3, %v1884_v55, %v1268_v3 }
 0xa6c   :  { %v1283_v6 = vmul.f32 %v1272_v4, %v2622_v27  ;;  %v1318_v11 = vunpack.c.l.b16 %v1302_v5 }
 0xa6e   :  { %v1289_v10 = vmul.f32 %v1833_v59, %v1283_v6  ;;  %v1319_v14 = vrot.slane %v1318_v11, 7 }
 0xa70   :  { %v1295_v12 = vadd.f32 %v1834_v62, %v1289_v10 }
 0xa72   :  { %v1301_v13 = vpack.c.bf16 %v1295_v12, %v1295_v12 }
 0xa74   :  { %v1317_v15 = vunpack.c.l.b16 %v1301_v13 }
 0xa76   :  { %v1321_v16 = vsel %vm1320_vm13, %v1319_v14, %v1317_v15 }
 0xa77   :  { %v1322_v17 = vpack.c.b16 %v1321_v16, %v1321_v16 }
 0xa79   :  { %1719 = vmatmul.msk.bf16.vlgmr.msra.gmra.mxu0 %vm296_vm0, %v1322_v17 }
 0xadd   :  { %v1432_v40 = vpop.f32.mrf.mxu2 }
 0xae5   :  { %v1434_v27 = vpop.f32.mrf.mxu2 }
 0xaf6   :  { %v1359_v21 = vpop.f32.mrf.mxu0 }
 0xaf7   :  { %v1360_v22 = vadd.f32 %v1835_v20, %v1359_v21 }
 0xaf9   :  { %v1367_v23 = vpack.c.bf16 %v1360_v22, %v1360_v22 }
 0xafb   :  { %1728 = vmatmul.msk.bf16.vlgmr.msra.gmra.mxu1 %vm1384_vm14, %v1367_v23 }
 0xafe   :  { %v1361_v25 = vpop.f32.mrf.mxu0 }
 0xb78   :  { %v1397_v30 = vpop.f32.mrf.mxu1 }
 0xb79   :  { %v1433_v31 = vadd.f32 %v1432_v40, %v1397_v30 }
 0xb7b   :  { %v1440_v33 = vadd.f32 %v1836_v29, %v1433_v31 }
 0xb7d   :  { %v1441_v34 = vmax.f32 %v1440_v33, 0.0 }
 0xb7f   :  { %v1451_v37 = vpack.c.bf16 %v1441_v34, %v1441_v34 }
 0xb80   :  { %v1399_v39 = vpop.f32.mrf.mxu1 }
 0xb81   :  { %1754 = vmatmul.msk.bf16.vlgmr.msrb.gmra.mxu0 %vm296_vm0, %v1451_v37 }
 0xbfe   :  { %v1491_v44 = vpop.f32.mrf.mxu0 }
 0xbff   :  { %v1492_v45 = vadd.f32 %v1837_v43, %v1491_v44 }
 0xc01   :  { %v1495_v24 = vmax.f32 %v1492_v45, 0.0 }
 0xc03   :  { %v1501_v46 = vpack.c.bf16 %v1495_v24, %v1495_v24 }
 0xc05   :  { %1763 = vmatmul.msk.bf16.vlgmr.msrb.gmra.mxu1 %vm1384_vm14, %v1501_v46 }
 0xc06   :  { %v1493_v47 = vpop.f32.mrf.mxu0 }
 0xc82   :  { %v1529_v35 = vpop.f32.mrf.mxu1 }
 0xc83   :  { %v1530_v49 = vadd.f32 %v1838_v48, %v1529_v35 }
 0xc85   :  { %v1534_v8 = vrot.slane %v1530_v49, 1  ;;  %1536 = vst [vmem:[%s2705_s23] sm:$0x1] %v1530_v49 }
 0xc87   :  { %1537 = vst [vmem:[%s2705_s23 + $0x1] sm:$0x1] %v1534_v8 }
 0xc8a   :  { %v1531_v50 = vpop.f32.mrf.mxu1 }
 0xc8b   :  { %1542 = vsyncpa [#allocation3], 1 }
 0xc8c   :  { %1543 = vsyncpa [#allocation5], 1 }
 0xc8d   :  { %1544 = vsyncpa [#allocation8], 1 }
 0xc8e   :  { %1545 = vsyncpa [#allocation11], 1 }
 0xc8f   :  { %1546 = vsyncpa [#allocation14], 1 }
 0xc90   :  { %1547 = vsyncpa [#allocation17], 1 }
 0xc91   :  { %1548 = vsyncpa [#allocation20], 1 }

</bundles_post_ra>
